<compile_context>
chip_gen: v6e
topology: v6e:2x2x1
jax: 0.10.0
libtpu: 0.0.40
codegen_flags: <defaults>
</compile_context>

<pallas_src>
import numpy as np
import jax
import jax.numpy as jnp
from jax.experimental import pallas as pl
from jax.experimental.pallas import tpu as pltpu


# --------------------------------------------------------------------------
# kernel
# --------------------------------------------------------------------------
def _mlp_kernel(x_ref, *refs):
    # x_ref : (tm, latent_dim)  streamed tile of latent rows (native dtype)
    # refs  : [W1t, b1, W2t, b2, ..., WLt, bL, o_ref]
    #   Wit : (in_i, out_i)  pre-transposed weight, compute dtype (bf16)  (resident)
    #   bi  : (1,   out_i)   bias row, f32                                (resident)
    #   o_ref: (tm, num_modulations) output tile
    o_ref = refs[-1]
    p_refs = refs[:-1]
    n_layers = len(p_refs) // 2

    h = x_ref[...]
    for li in range(n_layers):
        W = p_refs[2 * li][...]
        b = p_refs[2 * li + 1][...]
        # bf16 operands -> native MXU rate; f32 accumulation; bias add in f32.
        h = jnp.dot(h.astype(W.dtype), W,
                    preferred_element_type=jnp.float32) + b
        if li < n_layers - 1:
            h = h * jax.lax.logistic(h)          # SiLU in f32 (exp on EUP)
    o_ref[...] = h.astype(o_ref.dtype)           # single lane-dense full-width store


# --------------------------------------------------------------------------
# parameter preparation (do ONCE, outside the per-call path)
# --------------------------------------------------------------------------
def prepare_params(weights, biases, compute_dtype=jnp.bfloat16):
    """weights[i]: (out_i, in_i) (PyTorch Linear layout); biases[i]: (out_i,).
    Returns a tuple of (Wt, brow) pairs: Wt (in_i, out_i) in compute_dtype,
    brow (1, out_i) in f32."""
    params = []
    for W, b in zip(weights, biases):
        Wt = jnp.asarray(W, jnp.float32).T.astype(compute_dtype)   # (in, out)
        brow = jnp.asarray(b, jnp.float32).reshape(1, -1)
        params.append((Wt, brow))
    return tuple(params)


# --------------------------------------------------------------------------
# wrapper
# --------------------------------------------------------------------------
def latent_to_modulation(latent, params, *, tm=1024, out_dtype=None,
                         min_pallas_rows=128):
    """latent: (..., latent_dim); params: output of prepare_params().
    Returns (..., num_modulations) in out_dtype (default: latent.dtype)."""
    orig_shape = latent.shape
    in_dim = orig_shape[-1]
    out_dim = params[-1][0].shape[1]
    if out_dtype is None:
        out_dtype = latent.dtype

    x2d = latent.reshape(-1, in_dim)             # native dtype: no f32 upcast
    N = x2d.shape[0]

    # ---- tiny-batch fallback: fused XLA beats a single-step Pallas grid ----
    if N < min_pallas_rows:
        h = x2d
        for li, (Wt, brow) in enumerate(params):
            h = jnp.dot(h.astype(Wt.dtype), Wt,
                        preferred_element_type=jnp.float32) + brow
            if li < len(params) - 1:
                h = h * jax.lax.logistic(h)
        return h.astype(out_dtype).reshape(*orig_shape[:-1], out_dim)

    # ---- row-tile selection ----
    #  * >= 2 grid steps so both v7x TensorCores get work,
    #  * split N as evenly as possible (minimal padded rows),
    #  * sublane-aligned (multiple of 8).
    n_steps = max(pl.cdiv(N, tm), 2)
    tm_eff = ((pl.cdiv(N, n_steps) + 7) // 8) * 8
    n_steps = pl.cdiv(N, tm_eff)
    N_pad = n_steps * tm_eff
    if N_pad != N:
        x2d = jnp.pad(x2d, ((0, N_pad - N), (0, 0)))

    # ---- specs / cost estimate ----
    flat_params = []
    in_specs = [pl.BlockSpec((tm_eff, in_dim), lambda i: (i, 0))]   # streamed rows
    flops = 0
    transcendentals = 0
    bytes_accessed = (N_pad * in_dim * x2d.dtype.itemsize
                      + N_pad * out_dim * jnp.dtype(out_dtype).itemsize)
    for li, (Wt, brow) in enumerate(params):
        i_i, o_i = Wt.shape
        flat_params += [Wt, brow]
        # NOTE: weights/biases are resident (constant index_map); Pallas only
        # fetches them once.  pipeline_mode=pl.Buffered(1) would also drop the
        # second buffer, but the ~0.2 MiB saved is negligible here.
        in_specs += [pl.BlockSpec(Wt.shape, lambda i: (0, 0)),
                     pl.BlockSpec(brow.shape, lambda i: (0, 0))]
        flops += 2 * N_pad * i_i * o_i
        bytes_accessed += Wt.size * Wt.dtype.itemsize + brow.size * 4
        if li < len(params) - 1:
            transcendentals += N_pad * o_i           # one exp per SiLU element

    out = pl.pallas_call(
        _mlp_kernel,
        out_shape=jax.ShapeDtypeStruct((N_pad, out_dim), out_dtype),
        grid_spec=pltpu.PrefetchScalarGridSpec(
            num_scalar_prefetch=0,
            grid=(n_steps,),
            in_specs=in_specs,
            out_specs=pl.BlockSpec((tm_eff, out_dim), lambda i: (i, 0)),
        ),
        compiler_params=pltpu.CompilerParams(
            dimension_semantics=("parallel",)),
        cost_estimate=pl.CostEstimate(
            flops=flops,
            transcendentals=transcendentals,
            bytes_accessed=bytes_accessed),
    )(x2d, *flat_params)

    out = out[:N]
    return out.reshape(*orig_shape[:-1], out_dim)


# --------------------------------------------------------------------------
# pure-numpy gold reference (f32 math, matches the PyTorch module)
# --------------------------------------------------------------------------
def latent_to_modulation_ref(latent, weights, biases):
    h = np.asarray(latent, np.float32)
    for li, (W, b) in enumerate(zip(weights, biases)):
        h = h @ np.asarray(W, np.float32).T + np.asarray(b, np.float32)
        if li < len(weights) - 1:
            h = h * (1.0 / (1.0 + np.exp(-h)))   # SiLU
    return h


if __name__ == "__main__":
    # Module config: latent_dim=64, num_modulations=256, dim_hidden=128, num_layers=3
    latent_dim = 64
    num_modulations = 256
    dim_hidden = 128
    num_layers = 3

    key = jax.random.PRNGKey(0)
    keys = jax.random.split(key, 2 * num_layers + 1)

    # layer dims: latent_dim -> dim_hidden -> ... -> num_modulations
    dims = [latent_dim] + [dim_hidden] * (num_layers - 1) + [num_modulations]
    weights, biases = [], []
    for li in range(num_layers):
        fan_in, fan_out = dims[li], dims[li + 1]
        bound = 1.0 / np.sqrt(fan_in)  # stand-in for PyTorch nn.Linear default init
        W = jax.random.uniform(keys[2 * li], (fan_out, fan_in),
                               minval=-bound, maxval=bound, dtype=jnp.float32)
        b = jax.random.uniform(keys[2 * li + 1], (fan_out,),
                               minval=-bound, maxval=bound, dtype=jnp.float32)
        weights.append(W)
        biases.append(b)

    params = prepare_params(weights, biases, compute_dtype=jnp.bfloat16)  # once

    # --- streaming case: exercises the Pallas kernel (>= 2 grid steps) ---
    batch = 512
    latent = jax.random.normal(keys[-1], (batch, latent_dim), dtype=jnp.float32)
    out = jax.block_until_ready(latent_to_modulation(latent, params))
    ref = latent_to_modulation_ref(latent, weights, biases)
    assert out.shape == (batch, num_modulations), out.shape
    # bf16 MXU operands with f32 accumulation vs f32 reference
    np.testing.assert_allclose(np.asarray(out), ref, rtol=2e-2, atol=2e-2)

    # --- tiny-batch case: exercises the plain-XLA fallback path ---
    small = latent[:16]
    out_small = jax.block_until_ready(latent_to_modulation(small, params))
    ref_small = latent_to_modulation_ref(small, weights, biases)
    assert out_small.shape == (16, num_modulations), out_small.shape
    np.testing.assert_allclose(np.asarray(out_small), ref_small, rtol=2e-2, atol=2e-2)

    print("KERNEL_OK")
</pallas_src>

<mosaic_0001>
module attributes {stable_mosaic.version = 11 : i64} {
  func.func @_mlp_kernel(%arg0: i32, %arg1: memref<256x64xf32, #tpu.memory_space<vmem>>, %arg2: memref<64x128xbf16, #tpu.memory_space<vmem>>, %arg3: memref<1x128xf32, #tpu.memory_space<vmem>>, %arg4: memref<128x128xbf16, #tpu.memory_space<vmem>>, %arg5: memref<1x128xf32, #tpu.memory_space<vmem>>, %arg6: memref<128x256xbf16, #tpu.memory_space<vmem>>, %arg7: memref<1x256xf32, #tpu.memory_space<vmem>>, %arg8: memref<256x256xf32, #tpu.memory_space<vmem>>) attributes {dimension_semantics = [#tpu.dimension_semantics<parallel>], iteration_bounds = array<i64: 2>, scalar_prefetch = 0 : i64, scratch_operands = 0 : i64, tpu.core_type = #tpu.core_type<tc>, window_params = [{transform_indices = @transform_0, window_bounds = array<i64: 256, 64>}, {pipeline_mode = #tpu.pipeline_mode<synchronous>, transform_indices = @transform_1, window_bounds = array<i64: 64, 128>}, {pipeline_mode = #tpu.pipeline_mode<synchronous>, transform_indices = @transform_2, window_bounds = array<i64: 1, 128>}, {pipeline_mode = #tpu.pipeline_mode<synchronous>, transform_indices = @transform_3, window_bounds = array<i64: 128, 128>}, {pipeline_mode = #tpu.pipeline_mode<synchronous>, transform_indices = @transform_4, window_bounds = array<i64: 1, 128>}, {pipeline_mode = #tpu.pipeline_mode<synchronous>, transform_indices = @transform_5, window_bounds = array<i64: 128, 256>}, {pipeline_mode = #tpu.pipeline_mode<synchronous>, transform_indices = @transform_6, window_bounds = array<i64: 1, 256>}, {transform_indices = @transform_7, window_bounds = array<i64: 256, 256>}]} {
    %c0 = arith.constant 0 : index
    %c0_0 = arith.constant 0 : index
    %0 = vector.load %arg1[%c0, %c0_0] : memref<256x64xf32, #tpu.memory_space<vmem>>, vector<256x64xf32>
    %c0_1 = arith.constant 0 : index
    %c0_2 = arith.constant 0 : index
    %1 = vector.load %arg2[%c0_1, %c0_2] : memref<64x128xbf16, #tpu.memory_space<vmem>>, vector<64x128xbf16>
    %c0_3 = arith.constant 0 : index
    %c0_4 = arith.constant 0 : index
    %2 = vector.load %arg3[%c0_3, %c0_4] : memref<1x128xf32, #tpu.memory_space<vmem>>, vector<1x128xf32>
    %3 = arith.truncf %0 : vector<256x64xf32> to vector<256x64xbf16>
    %cst = arith.constant dense<0.000000e+00> : vector<256x128xf32>
    %4 = tpu.matmul %3, %1, %cst {dimension_numbers = #tpu.dot_dimension_numbers<[1], [0], [0], [1], [0, 0, 1, 1], [], []>} : vector<256x64xbf16>, vector<64x128xbf16>, vector<256x128xf32> -> vector<256x128xf32>
    %5 = vector.broadcast %2 : vector<1x128xf32> to vector<256x128xf32>
    %6 = arith.addf %4, %5 : vector<256x128xf32>
    %7 = arith.negf %6 : vector<256x128xf32>
    %8 = math.exp %7 : vector<256x128xf32>
    %cst_5 = arith.constant 1.000000e+00 : f32
    %9 = vector.broadcast %cst_5 : f32 to vector<256x128xf32>
    %10 = arith.addf %9, %8 : vector<256x128xf32>
    %11 = arith.divf %9, %10 : vector<256x128xf32>
    %12 = arith.mulf %6, %11 : vector<256x128xf32>
    %c0_6 = arith.constant 0 : index
    %c0_7 = arith.constant 0 : index
    %13 = vector.load %arg4[%c0_6, %c0_7] : memref<128x128xbf16, #tpu.memory_space<vmem>>, vector<128x128xbf16>
    %c0_8 = arith.constant 0 : index
    %c0_9 = arith.constant 0 : index
    %14 = vector.load %arg5[%c0_8, %c0_9] : memref<1x128xf32, #tpu.memory_space<vmem>>, vector<1x128xf32>
    %15 = arith.truncf %12 : vector<256x128xf32> to vector<256x128xbf16>
    %cst_10 = arith.constant dense<0.000000e+00> : vector<256x128xf32>
    %16 = tpu.matmul %15, %13, %cst_10 {dimension_numbers = #tpu.dot_dimension_numbers<[1], [0], [0], [1], [0, 0, 1, 1], [], []>} : vector<256x128xbf16>, vector<128x128xbf16>, vector<256x128xf32> -> vector<256x128xf32>
    %17 = vector.broadcast %14 : vector<1x128xf32> to vector<256x128xf32>
    %18 = arith.addf %16, %17 : vector<256x128xf32>
    %19 = arith.negf %18 : vector<256x128xf32>
    %20 = math.exp %19 : vector<256x128xf32>
    %cst_11 = arith.constant 1.000000e+00 : f32
    %21 = vector.broadcast %cst_11 : f32 to vector<256x128xf32>
    %22 = arith.addf %21, %20 : vector<256x128xf32>
    %23 = arith.divf %21, %22 : vector<256x128xf32>
    %24 = arith.mulf %18, %23 : vector<256x128xf32>
    %c0_12 = arith.constant 0 : index
    %c0_13 = arith.constant 0 : index
    %25 = vector.load %arg6[%c0_12, %c0_13] : memref<128x256xbf16, #tpu.memory_space<vmem>>, vector<128x256xbf16>
    %c0_14 = arith.constant 0 : index
    %c0_15 = arith.constant 0 : index
    %26 = vector.load %arg7[%c0_14, %c0_15] : memref<1x256xf32, #tpu.memory_space<vmem>>, vector<1x256xf32>
    %27 = arith.truncf %24 : vector<256x128xf32> to vector<256x128xbf16>
    %cst_16 = arith.constant dense<0.000000e+00> : vector<256x256xf32>
    %28 = tpu.matmul %27, %25, %cst_16 {dimension_numbers = #tpu.dot_dimension_numbers<[1], [0], [0], [1], [0, 0, 1, 1], [], []>} : vector<256x128xbf16>, vector<128x256xbf16>, vector<256x256xf32> -> vector<256x256xf32>
    %29 = vector.broadcast %26 : vector<1x256xf32> to vector<256x256xf32>
    %30 = arith.addf %28, %29 : vector<256x256xf32>
    %c0_17 = arith.constant 0 : index
    %c0_18 = arith.constant 0 : index
    %31 = vector.load %arg8[%c0_17, %c0_18] : memref<256x256xf32, #tpu.memory_space<vmem>>, vector<256x256xf32>
    tpu.vector_store %arg8[%c0_17, %c0_18], %30 {strides = array<i32>} : memref<256x256xf32, #tpu.memory_space<vmem>>, vector<256x256xf32>,
    return
  }
  func.func @transform_0(%arg0: i32) -> (i32, i32) {
    %c0_i32 = arith.constant 0 : i32
    %c0_i32_0 = arith.constant 0 : i32
    return %arg0, %c0_i32 : i32, i32
  }
  func.func @transform_1(%arg0: i32) -> (i32, i32) {
    %c0_i32 = arith.constant 0 : i32
    %c0_i32_0 = arith.constant 0 : i32
    %c0_i32_1 = arith.constant 0 : i32
    return %c0_i32, %c0_i32_0 : i32, i32
  }
  func.func @transform_2(%arg0: i32) -> (i32, i32) {
    %c0_i32 = arith.constant 0 : i32
    %c0_i32_0 = arith.constant 0 : i32
    %c0_i32_1 = arith.constant 0 : i32
    return %c0_i32, %c0_i32_0 : i32, i32
  }
  func.func @transform_3(%arg0: i32) -> (i32, i32) {
    %c0_i32 = arith.constant 0 : i32
    %c0_i32_0 = arith.constant 0 : i32
    %c0_i32_1 = arith.constant 0 : i32
    return %c0_i32, %c0_i32_0 : i32, i32
  }
  func.func @transform_4(%arg0: i32) -> (i32, i32) {
    %c0_i32 = arith.constant 0 : i32
    %c0_i32_0 = arith.constant 0 : i32
    %c0_i32_1 = arith.constant 0 : i32
    return %c0_i32, %c0_i32_0 : i32, i32
  }
  func.func @transform_5(%arg0: i32) -> (i32, i32) {
    %c0_i32 = arith.constant 0 : i32
    %c0_i32_0 = arith.constant 0 : i32
    %c0_i32_1 = arith.constant 0 : i32
    return %c0_i32, %c0_i32_0 : i32, i32
  }
  func.func @transform_6(%arg0: i32) -> (i32, i32) {
    %c0_i32 = arith.constant 0 : i32
    %c0_i32_0 = arith.constant 0 : i32
    %c0_i32_1 = arith.constant 0 : i32
    return %c0_i32, %c0_i32_0 : i32, i32
  }
  func.func @transform_7(%arg0: i32) -> (i32, i32) {
    %c0_i32 = arith.constant 0 : i32
    %c0_i32_0 = arith.constant 0 : i32
    return %arg0, %c0_i32 : i32, i32
  }
}

</mosaic_0001>

<bundles_post_ra>
// kernel: tpu_custom_call.1
= control target key start
LH: loop header
LB: loop body
LE: loop exit
PB: predicated region body
PF: predicated region fallthrough
CT: control target
= control target key end

     0   :  { %12 = vsyncpa [#allocation3], 0  ;;  %s3190_s0 = inlined_call_operand.vmem [shape: f32[512,64], index: 0, kind: input, shape index: {}]   ;;  %s3191_s1 = inlined_call_operand.vmem [shape: bf16[64,128], index: 1, kind: input, shape index: {}]   ;;  %s3192_s2 = inlined_call_operand.vmem [shape: f32[1,128], index: 2, kind: input, shape index: {}]   ;;  %s3193_s3 = inlined_call_operand.vmem [shape: bf16[128,128], index: 3, kind: input, shape index: {}]   ;;  %s3194_s4 = inlined_call_operand.vmem [shape: f32[1,128], index: 4, kind: input, shape index: {}]   ;;  %s3195_s5 = inlined_call_operand.vmem [shape: bf16[128,256], index: 5, kind: input, shape index: {}]   ;;  %s3196_s6 = inlined_call_operand.vmem [shape: f32[1,256], index: 6, kind: input, shape index: {}]   ;;  %s3197_s7 = inlined_call_operand.hbm [shape: f32[512,256], index: 7, kind: output, shape index: {}]  }
   0x1   :  { %14 = vsyncpa [#allocation3 + $0x1], 0  ;;  %s2445_s24 = smov 0   ;;  %s2447_s25 = smov 0  }
   0x2   :  { %s2449_s26 = smov 0   ;;  %s2451_s27 = smov 0  }
   0x3 LB: > { %s2466_s28 = sadd.s32 4294967295, %s2399_s27   ;;  %s1732_s29 = sadd.s32 4294967294, %s2399_s27   ;;  %s2399_s27 = sphi %s2451_s27, %s3203_s27   ;;  %s2395_s26 = sphi %s2449_s26, %s3202_s26   ;;  %s2391_s25 = sphi %s2447_s25, %s3201_s25   ;;  %s2387_s24 = sphi %s2445_s24, %s3200_s24  }
   0x4   : > { %s2470_s30 = sadd.s32 1, %s2399_s27   ;;  %s179_s8 = sadd.s32 1, %s2395_s26 }
   0x5   : > { %s176_s9 = ssub.s32 %s2399_s27, %s2470_s30  ;;  %p189_p0 = scmp.ne.s32.totalorder %s2395_s26, %s2391_s25 }
   0x6   : > { %p177_p1 = scmp.eq.s32.totalorder %s176_s9, 0  ;;  %p190_p2 = scmp.eq.s32.totalorder %s2466_s28, 1 }
   0x7   : > { %p195_p3 = scmp.ne.s32.totalorder %s2391_s25, %s2387_s24  ;;  %p196_p4 = scmp.eq.s32.totalorder %s1732_s29, 1 }
   0x8   : > { %s2481_s10 = scalar_select %p177_p1, %s2395_s26, %s179_s8  }
   0x9   : > { %p2483_p5 = por %p190_p2, %p189_p0  ;;  %p2487_p6 = por %p196_p4, %p195_p3 }
   0xa   : > { %p1735_p7 = scmp.ge.s32.totalorder %s2399_s27, 1  ;;  %p241_p8 = scmp.lt.s32.totalorder %s2399_s27, 3 }
   0xc   : > { %p242_p9 = pnand %p1735_p7, %p241_p8 }
   0xd   : > { %s1737_s15 = sshll.u32 (!%p242_p9), %s2466_s28, 5  ;;  %s270_s22 = sand.u32 (!%p242_p9), 1, %s2391_s25  }
   0xe   : > { %245 = sbr.rel (%p242_p9) target bundleno = 808 (0x328), region = 48  ;;  %p274_p10 = scmp.lt.s32.totalorder (!%p242_p9), %s1737_s15, 63 }
   0xf   : > { %s1736_s8 = sshll.u32 (!%p242_p9), %s270_s22, 9  ;;  %s1856_s13 = sshll.u32 (!%p242_p9), %s2466_s28, 13 }
  0x10   : > { %s3010_s9 = scalar_lea.vmem (!%p242_p9), [#allocation2], %s1736_s8  ;;  %s3141_s17 = scalar_lea.hbm (!%p242_p9), %s3197_s7, %s1856_s13 }
  0x11   : > { %s1670_s14 = sshll.u32 (!%p242_p9), %s3010_s9, 4  ;;  %s3150_s28 = scalar_lea.sflag (!%p242_p9), [#allocation3], %s270_s22  ;;  %s3143_s14 = int_to_ptr.vmem [resolvable:$true] %s1670_s14 }
  0x12   : > { %s2339_s18 = scalar_lea.vmem (!%p242_p9), %s3143_s14, 8192  ;;  %s2402_s19 = smov (!%p242_p9), [#allocation2]  }
  0x13   : > { %v2047_v0 = vld [vmem:[%s3191_s1 + $0x18] sm:$0xff]   ;;  %v2048_v1 = vld [vmem:[%s3191_s1 + $0x10] sm:$0xff]   ;;  %v2049_v2 = vld [vmem:[%s3191_s1 + $0x8] sm:$0xff]   ;;  %s3205_s15 = smov (!%p274_p10, %s1737_s15), 63  ;;  %vm368_vm0 = vcmask 523264   ;;  %p2340_p11 = scmp.ne.s32.totalorder %s3143_s14, %s2339_s18 }
  0x14   : > { %1901 = vmatprep.subr.bf16.mxu0 %v2047_v0  ;;  %s1738_s20 = sshll.u32 %s3205_s15, 3  ;;  %v2050_v5 = vld [vmem:[%s3191_s1] sm:$0xff]   ;;  %v2051_v52 = vld [vmem:[%s3193_s3 + $0x38] sm:$0xff]   ;;  %v2052_v53 = vld [vmem:[%s3193_s3 + $0x30] sm:$0xff]  }
  0x15   : > { %1902 = vmatpush3.bf16.msra.mxu0 %v2047_v0  ;;  %s2506_s23 = scalar_lea.vmem %s3190_s0, %s1738_s20  ;;  %1941 = vmatprep.subr.bf16.mxu1 %v2051_v52  ;;  %v2053_v54 = vld [vmem:[%s3193_s3 + $0x28] sm:$0xff]   ;;  %v2054_v55 = vld [vmem:[%s3193_s3 + $0x20] sm:$0xff]   ;;  %v2055_v56 = vld [vmem:[%s3193_s3 + $0x18] sm:$0xff]   ;;  %p2341_p12 = pnand %p2340_p11, %p2483_p5 }
  0x16   : > { %1903 = vmatprep.subr.bf16.mxu0 %v2048_v1  ;;  %v281_v3 = vld [vmem:[%s2506_s23] sm:$0xff]  ;;  %v282_v4 = vld [vmem:[%s2506_s23 + $0x8] sm:$0xff]  ;;  %v283_v7 = vld [vmem:[%s2506_s23 + $0x10] sm:$0xff]  ;;  %1942 = vmatpush3.bf16.msra.mxu1 %v2051_v52  ;;  %s2343_s20 = sshll.u32 %s2402_s19, 4  ;;  %s2344_s20 = int_to_ptr.vmem [resolvable:$false] %s2343_s20 }
  0x17   : > { %v322_v6 = vpack.c.bf16 %v282_v4, %v281_v3  ;;  %v284_v8 = vld [vmem:[%s2506_s23 + $0x18] sm:$0xff]  ;;  %v285_v9 = vld [vmem:[%s2506_s23 + $0x20] sm:$0xff]  ;;  %v286_v10 = vld [vmem:[%s2506_s23 + $0x28] sm:$0xff]  ;;  %1943 = vmatprep.subr.bf16.mxu1 %v2052_v53  ;;  %p2342_p13 = pneg %p2341_p12  ;;  %s2345_s21 = scalar_lea.vmem %s2344_s20, 16384 }
  0x18   : > { %v323_v11 = vpack.c.bf16 %v284_v8, %v283_v7  ;;  %v324_v12 = vpack.c.bf16 %v286_v10, %v285_v9  ;;  %v287_v13 = vld [vmem:[%s2506_s23 + $0x30] sm:$0xff]  ;;  %v288_v14 = vld [vmem:[%s2506_s23 + $0x38] sm:$0xff]  ;;  %v289_v15 = vld [vmem:[%s2506_s23 + $0x40] sm:$0xff]  ;;  %p2346_p0 = scmp.lt.s32.totalorder %s3143_s14, %s2344_s20  ;;  %p2347_p1 = scmp.lt.s32.totalorder %s2345_s21, %s2339_s18 }
  0x19   : > { %1904 = vmatpush3.bf16.msra.mxu0 %v2048_v1  ;;  %1909 = vmatprep.mubr.msk.bf16.mxu0 %vm368_vm0, %v322_v6  ;;  %v290_v16 = vld [vmem:[%s2506_s23 + $0x48] sm:$0xff]  ;;  %v325_v17 = vpack.c.bf16 %v288_v14, %v287_v13  ;;  %v291_v19 = vld [vmem:[%s2506_s23 + $0x50] sm:$0xff]  ;;  %v292_v20 = vld [vmem:[%s2506_s23 + $0x58] sm:$0xff] }
  0x1a   : > { %1905 = vmatprep.subr.bf16.mxu0 %v2049_v2  ;;  %v326_v18 = vpack.c.bf16 %v290_v16, %v289_v15  ;;  %v293_v21 = vld [vmem:[%s2506_s23 + $0x60] sm:$0xff]  ;;  %v294_v22 = vld [vmem:[%s2506_s23 + $0x68] sm:$0xff]  ;;  %v327_v23 = vpack.c.bf16 %v292_v20, %v291_v19  ;;  %v295_v25 = vld [vmem:[%s2506_s23 + $0x70] sm:$0xff]  ;;  %1944 = vmatpush3.bf16.msra.mxu1 %v2052_v53  ;;  %p2348_p2 = por %p2347_p1, %p2346_p0 }
  0x1b   : > { %v328_v24 = vpack.c.bf16 %v294_v22, %v293_v21  ;;  %v296_v26 = vld [vmem:[%s2506_s23 + $0x78] sm:$0xff]  ;;  %v297_v27 = vld [vmem:[%s2506_s23 + $0x80] sm:$0xff]  ;;  %v298_v28 = vld [vmem:[%s2506_s23 + $0x88] sm:$0xff]  ;;  %1945 = vmatprep.subr.bf16.mxu1 %v2053_v54 }
  0x1c   : > { %v329_v29 = vpack.c.bf16 %v296_v26, %v295_v25  ;;  %v330_v30 = vpack.c.bf16 %v298_v28, %v297_v27  ;;  %v299_v31 = vld [vmem:[%s2506_s23 + $0x90] sm:$0xff]  ;;  %v300_v32 = vld [vmem:[%s2506_s23 + $0x98] sm:$0xff]  ;;  %v301_v33 = vld [vmem:[%s2506_s23 + $0xa0] sm:$0xff]  ;;  %p2349_p3 = pnand %p2348_p2, %p2342_p13 }
  0x1d   : > { %1906 = vmatpush3.bf16.msra.mxu0 %v2049_v2  ;;  %v302_v34 = vld [vmem:[%s2506_s23 + $0xa8] sm:$0xff]  ;;  %v331_v35 = vpack.c.bf16 %v300_v32, %v299_v31  ;;  %v303_v37 = vld [vmem:[%s2506_s23 + $0xb0] sm:$0xff]  ;;  %v304_v38 = vld [vmem:[%s2506_s23 + $0xb8] sm:$0xff] }
  0x1e   : > { %1907 = vmatprep.subr.bf16.mxu0 %v2050_v5  ;;  %v332_v36 = vpack.c.bf16 %v302_v34, %v301_v33  ;;  %v305_v39 = vld [vmem:[%s2506_s23 + $0xc0] sm:$0xff]  ;;  %v306_v40 = vld [vmem:[%s2506_s23 + $0xc8] sm:$0xff]  ;;  %v333_v41 = vpack.c.bf16 %v304_v38, %v303_v37  ;;  %v307_v43 = vld [vmem:[%s2506_s23 + $0xd0] sm:$0xff]  ;;  %1946 = vmatpush3.bf16.msra.mxu1 %v2053_v54 }
  0x1f   : > { %v334_v42 = vpack.c.bf16 %v306_v40, %v305_v39  ;;  %v308_v44 = vld [vmem:[%s2506_s23 + $0xd8] sm:$0xff]  ;;  %v309_v45 = vld [vmem:[%s2506_s23 + $0xe0] sm:$0xff]  ;;  %v310_v46 = vld [vmem:[%s2506_s23 + $0xe8] sm:$0xff]  ;;  %1947 = vmatprep.subr.bf16.mxu1 %v2054_v55 }
  0x20   : > { %v335_v47 = vpack.c.bf16 %v308_v44, %v307_v43  ;;  %v336_v48 = vpack.c.bf16 %v310_v46, %v309_v45  ;;  %v311_v49 = vld [vmem:[%s2506_s23 + $0xf0] sm:$0xff]  ;;  %v312_v50 = vld [vmem:[%s2506_s23 + $0xf8] sm:$0xff]  ;;  %v2057_v58 = vld [vmem:[%s3193_s3 + $0x8] sm:$0xff]  }
  0x21   : > { %1908 = vmatpush3.bf16.msra.mxu0 %v2050_v5  ;;  %v337_v51 = vpack.c.bf16 %v312_v50, %v311_v49  ;;  %v2056_v57 = vld [vmem:[%s3193_s3 + $0x10] sm:$0xff]   ;;  %v2058_v59 = vld [vmem:[%s3193_s3] sm:$0xff]  }
  0x22   : > { %1948 = vmatpush3.bf16.msra.mxu1 %v2054_v55  ;;  %v2586_v60 = vld [vmem:[%s3195_s5 + $0x70] ss:$8 sps:$4 sm:$0xff]   ;;  %v2061_v61 = vld [vmem:[%s3195_s5 + $0x74] ss:$8 sps:$4 sm:$0xff]   ;;  %v2595_v62 = vld [vmem:[%s3192_s2] ss:$0 sm:$0xff] }
  0x23   : > { %1949 = vmatprep.subr.bf16.mxu1 %v2055_v56  ;;  %1398 = vmatprep.subr.bf16.mxu0 %v2061_v61 }
  0x24   : > { %1910 = vmatmul.mubr.msk.bf16.vlgmr.msra.gmra.mxu0 %vm368_vm0, %v323_v11 }
  0x25   : > { %1913 = vmatprep.mubr.msk.bf16.mxu0 %vm368_vm0, %v324_v12  ;;  %1399 = vmatpush1.bf16.msra.mxu0 %v2586_v60 }
  0x26   : > { %1950 = vmatpush3.bf16.msra.mxu1 %v2055_v56 }
  0x27   : > { %1951 = vmatprep.subr.bf16.mxu1 %v2056_v57 }
  0x2a   : > { %1952 = vmatpush3.bf16.msra.mxu1 %v2056_v57 }
  0x2b   : > { %1953 = vmatprep.subr.bf16.mxu1 %v2057_v58 }
  0x2c   : > { %1914 = vmatmul.mubr.msk.bf16.gmra.mxu0 %vm368_vm0, %v325_v17 }
  0x2d   : > { %1917 = vmatprep.mubr.msk.bf16.mxu0 %vm368_vm0, %v326_v18 }
  0x2e   : > { %1954 = vmatpush3.bf16.msra.mxu1 %v2057_v58 }
  0x2f   : > { %1955 = vmatprep.subr.bf16.mxu1 %v2058_v59 }
  0x32   : > { %1956 = vmatpush3.bf16.msra.mxu1 %v2058_v59 }
  0x33   : > { %1989 = vmatprep.subr.bf16.mxu1 %v2061_v61 }
  0x34   : > { %1918 = vmatmul.mubr.msk.bf16.gmra.mxu0 %vm368_vm0, %v327_v23 }
  0x35   : > { %1921 = vmatprep.mubr.msk.bf16.mxu0 %vm368_vm0, %v328_v24 }
  0x3c   : > { %1922 = vmatmul.mubr.msk.bf16.gmra.mxu0 %vm368_vm0, %v329_v29 }
  0x3d   : > { %1925 = vmatprep.mubr.msk.bf16.mxu0 %vm368_vm0, %v330_v30 }
  0x44   : > { %1926 = vmatmul.mubr.msk.bf16.gmra.mxu0 %vm368_vm0, %v331_v35 }
  0x45   : > { %1929 = vmatprep.mubr.msk.bf16.mxu0 %vm368_vm0, %v332_v36 }
  0x4c   : > { %1930 = vmatmul.mubr.msk.bf16.gmra.mxu0 %vm368_vm0, %v333_v41 }
  0x4d   : > { %1933 = vmatprep.mubr.msk.bf16.mxu0 %vm368_vm0, %v334_v42 }
  0x54   : > { %1934 = vmatmul.mubr.msk.bf16.gmra.mxu0 %vm368_vm0, %v335_v47 }
  0x55   : > { %1937 = vmatprep.mubr.msk.bf16.mxu0 %vm368_vm0, %v336_v48 }
  0x5c   : > { %1938 = vmatmul.mubr.msk.bf16.gmra.mxu0 %vm368_vm0, %v337_v51 }
  0xe4   : > { %v1911_v63 = vpop.f32.mrf.mxu0 }
  0xe5   : > { %v2598_v0 = vadd.f32 %v1911_v63, %v2595_v62 }
  0xe6   : > { %v451_v1 = vpop.f32.mrf.mxu0 }
  0xe7   : > { %v1762_v2 = vmul.f32 -1.442695, %v2598_v0  ;;  %v2602_v3 = vadd.f32 %v2595_v62, %v451_v1 }
  0xe8   : > { %v1912_v4 = vpop.f32.mrf.mxu0 }
  0xe9   : > { %2083 = vpow2.f32 %v1762_v2  ;;  %v1760_v5 = vmul.f32 -1.442695, %v2602_v3  ;;  %v2606_v6 = vadd.f32 %v1912_v4, %v2595_v62 }
  0xea   : > { %v454_v7 = vpop.f32.mrf.mxu0 }
  0xeb   : > { %2085 = vpow2.f32 %v1760_v5  ;;  %v1763_v8 = vmul.f32 -1.442695, %v2606_v6  ;;  %v2610_v9 = vadd.f32 %v2595_v62, %v454_v7 }
  0xec   : > { %v1915_v10 = vpop.f32.mrf.mxu0 }
  0xed   : > { %2087 = vpow2.f32 %v1763_v8  ;;  %v1761_v11 = vmul.f32 -1.442695, %v2610_v9  ;;  %v2614_v12 = vadd.f32 %v1915_v10, %v2595_v62 }
  0xee   : > { %v467_v13 = vpop.f32.mrf.mxu0 }
  0xef   : > { %2089 = vpow2.f32 %v1761_v11  ;;  %v1766_v14 = vmul.f32 -1.442695, %v2614_v12  ;;  %v2618_v15 = vadd.f32 %v2595_v62, %v467_v13 }
  0xf0   : > { %v1916_v16 = vpop.f32.mrf.mxu0 }
  0xf1   : > { %2091 = vpow2.f32 %v1766_v14  ;;  %v1764_v17 = vmul.f32 -1.442695, %v2618_v15  ;;  %v2622_v18 = vadd.f32 %v1916_v16, %v2595_v62 }
  0xf2   : > { %v470_v19 = vpop.f32.mrf.mxu0 }
  0xf3   : > { %2093 = vpow2.f32 %v1764_v17  ;;  %v1767_v20 = vmul.f32 -1.442695, %v2622_v18  ;;  %v2626_v21 = vadd.f32 %v2595_v62, %v470_v19 }
  0xf4   : > { %v1919_v22 = vpop.f32.mrf.mxu0 }
  0xf5   : > { %2095 = vpow2.f32 %v1767_v20  ;;  %v1765_v23 = vmul.f32 -1.442695, %v2626_v21  ;;  %v2630_v24 = vadd.f32 %v1919_v22, %v2595_v62 }
  0xf6   : > { %v2084_v25 = vpop.eup %2083  ;;  %v483_v26 = vpop.f32.mrf.mxu0 }
  0xf7   : > { %v676_v27 = vadd.f32 1.0, %v2084_v25  ;;  %2097 = vpow2.f32 %v1765_v23  ;;  %v1770_v28 = vmul.f32 -1.442695, %v2630_v24  ;;  %v2634_v29 = vadd.f32 %v2595_v62, %v483_v26 }
  0xf8   : > { %v2086_v30 = vpop.eup %2085  ;;  %v1920_v31 = vpop.f32.mrf.mxu0 }
  0xf9   : > { %2099 = vrcp.f32 %v676_v27  ;;  %v674_v32 = vadd.f32 1.0, %v2086_v30  ;;  %v1768_v33 = vmul.f32 -1.442695, %v2634_v29  ;;  %v2638_v34 = vadd.f32 %v1920_v31, %v2595_v62 }
  0xfa   : > { %v2088_v35 = vpop.eup %2087  ;;  %2101 = vpow2.f32 %v1770_v28  ;;  %v486_v36 = vpop.f32.mrf.mxu0 }
  0xfb   : > { %2103 = vrcp.f32 %v674_v32  ;;  %v677_v37 = vadd.f32 1.0, %v2088_v35  ;;  %v1771_v38 = vmul.f32 -1.442695, %v2638_v34  ;;  %v2642_v39 = vadd.f32 %v2595_v62, %v486_v36 }
  0xfc   : > { %v2090_v40 = vpop.eup %2089  ;;  %2105 = vpow2.f32 %v1768_v33  ;;  %v1923_v41 = vpop.f32.mrf.mxu0 }
  0xfd   : > { %2107 = vrcp.f32 %v677_v37  ;;  %v675_v42 = vadd.f32 1.0, %v2090_v40  ;;  %v1769_v43 = vmul.f32 -1.442695, %v2642_v39  ;;  %v2646_v44 = vadd.f32 %v1923_v41, %v2595_v62 }
  0xfe   : > { %v2092_v45 = vpop.eup %2091  ;;  %2109 = vpow2.f32 %v1771_v38  ;;  %v499_v46 = vpop.f32.mrf.mxu0 }
  0xff   : > { %2111 = vrcp.f32 %v675_v42  ;;  %v680_v47 = vadd.f32 1.0, %v2092_v45  ;;  %v1774_v48 = vmul.f32 -1.442695, %v2646_v44  ;;  %v2650_v49 = vadd.f32 %v2595_v62, %v499_v46 }
 0x100   : > { %v2094_v50 = vpop.eup %2093  ;;  %2113 = vpow2.f32 %v1769_v43  ;;  %v1924_v51 = vpop.f32.mrf.mxu0 }
 0x101   : > { %2115 = vrcp.f32 %v680_v47  ;;  %v678_v52 = vadd.f32 1.0, %v2094_v50  ;;  %v1772_v53 = vmul.f32 -1.442695, %v2650_v49  ;;  %v2654_v54 = vadd.f32 %v1924_v51, %v2595_v62 }
 0x102   : > { %v2096_v55 = vpop.eup %2095  ;;  %2117 = vpow2.f32 %v1774_v48  ;;  %v502_v56 = vpop.f32.mrf.mxu0 }
 0x103   : > { %2119 = vrcp.f32 %v678_v52  ;;  %v681_v57 = vadd.f32 1.0, %v2096_v55  ;;  %v1775_v58 = vmul.f32 -1.442695, %v2654_v54  ;;  %v2658_v59 = vadd.f32 %v2595_v62, %v502_v56 }
 0x104   : > { %v2098_v61 = vpop.eup %2097  ;;  %2121 = vpow2.f32 %v1772_v53  ;;  %v1927_v63 = vpop.f32.mrf.mxu0 }
 0x105   : > { %2123 = vrcp.f32 %v681_v57  ;;  %v679_v1 = vadd.f32 1.0, %v2098_v61  ;;  %v1773_v2 = vmul.f32 -1.442695, %v2658_v59  ;;  %v2662_v4 = vadd.f32 %v1927_v63, %v2595_v62 }
 0x106   : > { %v2100_v5 = vpop.eup %2099  ;;  %2125 = vpow2.f32 %v1775_v58  ;;  %v515_v7 = vpop.f32.mrf.mxu0 }
 0x107   : > { %v2102_v8 = vpop.eup %2101  ;;  %2127 = vrcp.f32 %v679_v1  ;;  %v1778_v10 = vmul.f32 -1.442695, %v2662_v4  ;;  %v2666_v11 = vadd.f32 %v2595_v62, %v515_v7 }
 0x108   : > { %v2104_v13 = vpop.eup %2103  ;;  %v684_v14 = vadd.f32 1.0, %v2102_v8  ;;  %2129 = vpow2.f32 %v1773_v2  ;;  %v1928_v16 = vpop.f32.mrf.mxu0 }
 0x109   : > { %v2106_v17 = vpop.eup %2105  ;;  %2131 = vpow2.f32 %v1778_v10  ;;  %v1776_v19 = vmul.f32 -1.442695, %v2666_v11  ;;  %v2670_v20 = vadd.f32 %v1928_v16, %v2595_v62  ;;  %v770_v43 = vmul.f32 %v2104_v13, %v2602_v3 }
 0x10a   : > { %v2108_v22 = vpop.eup %2107  ;;  %2133 = vrcp.f32 %v684_v14  ;;  %v682_v23 = vadd.f32 1.0, %v2106_v17  ;;  %v518_v25 = vpop.f32.mrf.mxu0 }
 0x10b   : > { %v2110_v26 = vpop.eup %2109  ;;  %2135 = vpow2.f32 %v1776_v19  ;;  %v1779_v27 = vmul.f32 -1.442695, %v2670_v20  ;;  %v2674_v28 = vadd.f32 %v2595_v62, %v518_v25  ;;  %v773_v31 = vmul.f32 %v2108_v22, %v2606_v6 }
 0x10c   : > { %v2112_v30 = vpop.eup %2111  ;;  %2137 = vrcp.f32 %v682_v23  ;;  %v685_v32 = vadd.f32 1.0, %v2110_v26  ;;  %v1931_v33 = vpop.f32.mrf.mxu0  ;;  %v772_v6 = vmul.f32 %v2100_v5, %v2598_v0 }
 0x10d   : > { %v2114_v35 = vpop.eup %2113  ;;  %2139 = vpow2.f32 %v1779_v27  ;;  %v1777_v36 = vmul.f32 -1.442695, %v2674_v28  ;;  %v2679_v37 = vadd.f32 %v1931_v33, %v2595_v62  ;;  %v771_v38 = vmul.f32 %v2112_v30, %v2610_v9 }
 0x10e   : > { %v2116_v40 = vpop.eup %2115  ;;  %2141 = vrcp.f32 %v685_v32  ;;  %v683_v41 = vadd.f32 1.0, %v2114_v35  ;;  %v531_v42 = vpop.f32.mrf.mxu0  ;;  %v820_v55 = vpack.c.bf16 %v773_v31, %v772_v6 }
 0x10f   : > { %v2118_v45 = vpop.eup %2117  ;;  %2143 = vpow2.f32 %v1777_v36  ;;  %v1782_v46 = vmul.f32 -1.442695, %v2679_v37  ;;  %v2686_v47 = vadd.f32 %v2595_v62, %v531_v42  ;;  %v819_v9 = vpack.c.bf16 %v771_v38, %v770_v43 }
 0x110   : > { %v2120_v48 = vpop.eup %2119  ;;  %2145 = vrcp.f32 %v683_v41  ;;  %v688_v50 = vadd.f32 1.0, %v2118_v45  ;;  %v1932_v51 = vpop.f32.mrf.mxu0  ;;  %v776_v17 = vmul.f32 %v2116_v40, %v2614_v12 }
 0x111   : > { %v2122_v52 = vpop.eup %2121  ;;  %2147 = vpow2.f32 %v1782_v46  ;;  %v1780_v53 = vmul.f32 -1.442695, %v2686_v47  ;;  %v2690_v3 = vadd.f32 %v1932_v51, %v2595_v62  ;;  %1957 = vmatprep.mubr.bf16.mxu1 %v819_v9  ;;  %v774_v19 = vmul.f32 %v2120_v48, %v2618_v15 }
 0x112   : > { %v2124_v0 = vpop.eup %2123  ;;  %2149 = vrcp.f32 %v688_v50  ;;  %v686_v56 = vadd.f32 1.0, %v2122_v52  ;;  %v534_v57 = vpop.f32.mrf.mxu0  ;;  %1958 = vmatmul.mubr.bf16.vlgmr.msra.gmra.mxu1 %v820_v55 }
 0x113   : > { %v2126_v58 = vpop.eup %2125  ;;  %2151 = vpow2.f32 %v1780_v53  ;;  %v1783_v61 = vmul.f32 -1.442695, %v2690_v3  ;;  %v2694_v63 = vadd.f32 %v2595_v62, %v534_v57  ;;  %v777_v2 = vmul.f32 %v2124_v0, %v2622_v18  ;;  %1997 = vmatpush1.bf16.msra.mxu1 %v2586_v60 }
 0x114   : > { %v2128_v1 = vpop.eup %2127  ;;  %2153 = vrcp.f32 %v686_v56  ;;  %v689_v5 = vadd.f32 1.0, %v2126_v58  ;;  %v1935_v7 = vpop.f32.mrf.mxu0 }
 0x115   : > { %v2130_v8 = vpop.eup %2129  ;;  %v775_v10 = vmul.f32 %v2128_v1, %v2626_v21  ;;  %2155 = vpow2.f32 %v1783_v61  ;;  %v1781_v13 = vmul.f32 -1.442695, %v2694_v63  ;;  %v2701_v14 = vadd.f32 %v1935_v7, %v2595_v62 }
 0x116   : > { %v2132_v16 = vpop.eup %2131  ;;  %2157 = vrcp.f32 %v689_v5  ;;  %v687_v18 = vadd.f32 1.0, %v2130_v8  ;;  %v547_v22 = vpop.f32.mrf.mxu0  ;;  %v822_v31 = vpack.c.bf16 %v777_v2, %v776_v17 }
 0x117   : > { %v2134_v23 = vpop.eup %2133  ;;  %v692_v25 = vadd.f32 1.0, %v2132_v16  ;;  %2159 = vpow2.f32 %v1781_v13  ;;  %v1786_v60 = vmul.f32 -1.442695, %v2701_v14  ;;  %v2707_v21 = vadd.f32 %v2595_v62, %v547_v22 }
 0x118   : > { %v2136_v26 = vpop.eup %2135  ;;  %2161 = vrcp.f32 %v687_v18  ;;  %v1936_v27 = vpop.f32.mrf.mxu0  ;;  %v821_v30 = vpack.c.bf16 %v775_v10, %v774_v19  ;;  %v780_v52 = vmul.f32 %v2134_v23, %v2630_v24 }
 0x119   : > { %v2138_v32 = vpop.eup %2137  ;;  %2163 = vrcp.f32 %v692_v25  ;;  %v690_v12 = vadd.f32 1.0, %v2136_v26  ;;  %v1784_v15 = vmul.f32 -1.442695, %v2707_v21  ;;  %v2711_v33 = vadd.f32 %v1936_v27, %v2595_v62 }
 0x11a   : > { %v2140_v35 = vpop.eup %2139  ;;  %2165 = vpow2.f32 %v1786_v60  ;;  %1961 = vmatprep.mubr.bf16.mxu1 %v821_v30  ;;  %v550_v36 = vpop.f32.mrf.mxu0  ;;  %v778_v53 = vmul.f32 %v2138_v32, %v2634_v29 }
 0x11b   : > { %v2142_v38 = vpop.eup %2141  ;;  %2167 = vrcp.f32 %v690_v12  ;;  %v693_v40 = vadd.f32 1.0, %v2140_v35  ;;  %v1787_v41 = vmul.f32 -1.442695, %v2711_v33  ;;  %v2715_v42 = vadd.f32 %v2595_v62, %v550_v36  ;;  %1962 = vmatmul.mubr.bf16.gmra.mxu1 %v822_v31 }
 0x11c   : > { %v2144_v43 = vpop.eup %2143  ;;  %v781_v45 = vmul.f32 %v2142_v38, %v2638_v34  ;;  %2169 = vpow2.f32 %v1784_v15  ;;  %v1939_v6 = vpop.f32.mrf.mxu0 }
 0x11d   : > { %v2146_v46 = vpop.eup %2145  ;;  %2171 = vrcp.f32 %v693_v40  ;;  %v691_v48 = vadd.f32 1.0, %v2144_v43  ;;  %v1785_v50 = vmul.f32 -1.442695, %v2715_v42  ;;  %v2720_v51 = vadd.f32 %v1939_v6, %v2595_v62 }
 0x11e   : > { %v2148_v9 = vpop.eup %2147  ;;  %v779_v55 = vmul.f32 %v2146_v46, %v2642_v39  ;;  %2173 = vpow2.f32 %v1787_v41  ;;  %v563_v0 = vpop.f32.mrf.mxu0  ;;  %v824_v5 = vpack.c.bf16 %v781_v45, %v780_v52 }
 0x11f   : > { %v2150_v34 = vpop.eup %2149  ;;  %2175 = vrcp.f32 %v691_v48  ;;  %v696_v56 = vadd.f32 1.0, %v2148_v9  ;;  %v1790_v57 = vmul.f32 -1.442695, %v2720_v51  ;;  %v2727_v58 = vadd.f32 %v2595_v62, %v563_v0 }
 0x120   : > { %v2152_v61 = vpop.eup %2151  ;;  %2177 = vpow2.f32 %v1785_v50  ;;  %v1940_v1 = vpop.f32.mrf.mxu0  ;;  %v823_v2 = vpack.c.bf16 %v779_v55, %v778_v53 }
 0x121   : > { %v2154_v24 = vpop.eup %2153  ;;  %2179 = vrcp.f32 %v696_v56  ;;  %v694_v29 = vadd.f32 1.0, %v2152_v61  ;;  %v1788_v39 = vmul.f32 -1.442695, %v2727_v58  ;;  %v2731_v7 = vadd.f32 %v1940_v1, %v2595_v62 }
 0x122   : > { %v2156_v8 = vpop.eup %2155  ;;  %2181 = vpow2.f32 %v1790_v57  ;;  %1965 = vmatprep.mubr.bf16.mxu1 %v823_v2  ;;  %v566_v10 = vpop.f32.mrf.mxu0  ;;  %v782_v27 = vmul.f32 %v2154_v24, %v2650_v49 }
 0x123   : > { %v2158_v13 = vpop.eup %2157  ;;  %2183 = vrcp.f32 %v694_v29  ;;  %v697_v16 = vadd.f32 1.0, %v2156_v8  ;;  %v1791_v17 = vmul.f32 -1.442695, %v2731_v7  ;;  %v2735_v19 = vadd.f32 %v2595_v62, %v566_v10  ;;  %1966 = vmatmul.mubr.bf16.gmra.mxu1 %v824_v5 }
 0x124   : > { %v2160_v18 = vpop.eup %2159  ;;  %2185 = vpow2.f32 %v1788_v39  ;;  %v785_v23 = vmul.f32 %v2158_v13, %v2654_v54  ;;  %v784_v62 = vmul.f32 %v2150_v34, %v2646_v44 }
 0x125   : > { %v2162_v22 = vpop.eup %2161  ;;  %2187 = vrcp.f32 %v697_v16  ;;  %v695_v25 = vadd.f32 1.0, %v2160_v18  ;;  %v1789_v60 = vmul.f32 -1.442695, %v2735_v19 }
 0x126   : > { %v2164_v26 = vpop.eup %2163  ;;  %v783_v30 = vmul.f32 %v2162_v22, %v2658_v59  ;;  %2189 = vpow2.f32 %v1791_v17  ;;  %v826_v35 = vpack.c.bf16 %v785_v23, %v784_v62  ;;  %v2071_v62 = vld [vmem:[%s3195_s5 + $0x30] ss:$8 sps:$4 sm:$0xff]  }
 0x127   : > { %v2166_v31 = vpop.eup %2165  ;;  %2191 = vrcp.f32 %v695_v25  ;;  %v788_v50 = vmul.f32 %v2164_v26, %v2662_v4 }
 0x128   : > { %v2168_v32 = vpop.eup %2167  ;;  %2193 = vpow2.f32 %v1789_v60  ;;  %v825_v12 = vpack.c.bf16 %v783_v30, %v782_v27  ;;  %v700_v40 = vadd.f32 1.0, %v2166_v31  ;;  %v2062_v30 = vld [vmem:[%s3195_s5 + $0x60] ss:$8 sps:$4 sm:$0xff]   ;;  %v2073_v31 = vld [vmem:[%s3195_s5 + $0x34] ss:$8 sps:$4 sm:$0xff]  }
 0x129   : > { %v2170_v15 = vpop.eup %2169  ;;  %v786_v59 = vmul.f32 %v2168_v32, %v2666_v11  ;;  %v2076_v32 = vld [vmem:[%s3195_s5 + $0x24] ss:$8 sps:$4 sm:$0xff]  }
 0x12a   : > { %v2172_v54 = vpop.eup %2171  ;;  %v698_v36 = vadd.f32 1.0, %v2170_v15  ;;  %1969 = vmatprep.mubr.bf16.mxu1 %v825_v12  ;;  %v2074_v12 = vld [vmem:[%s3195_s5 + $0x20] ss:$8 sps:$4 sm:$0xff]   ;;  %v2079_v15 = vld [vmem:[%s3195_s5 + $0x14] ss:$8 sps:$4 sm:$0xff]  }
 0x12b   : > { %v2174_v38 = vpop.eup %2173  ;;  %1970 = vmatmul.mubr.bf16.gmra.mxu1 %v826_v35  ;;  %v789_v45 = vmul.f32 %v2172_v54, %v2670_v20  ;;  %v2077_v35 = vld [vmem:[%s3195_s5 + $0x10] ss:$8 sps:$4 sm:$0xff]   ;;  %v2082_v54 = vld [vmem:[%s3195_s5 + $0x4] ss:$8 sps:$4 sm:$0xff]  }
 0x12c   : > { %v2176_v41 = vpop.eup %2175  ;;  %v701_v49 = vadd.f32 1.0, %v2174_v38  ;;  %2195 = vrcp.f32 %v698_v36  ;;  %v2080_v36 = vld [vmem:[%s3195_s5] ss:$8 sps:$4 sm:$0xff]   ;;  %v2401_v38 = vmov 0  }
 0x12d   : > { %v2178_v43 = vpop.eup %2177  ;;  %v787_v44 = vmul.f32 %v2176_v41, %v2674_v28  ;;  %v828_v55 = vpack.c.bf16 %v789_v45, %v788_v50  ;;  %1430 = vmatprep.mubr.bf16.mxu0 %v2401_v38  ;;  %v2805_v41 = vld [vmem:[%s3194_s4] ss:$0 sm:$0xff] }
 0x12e   : > { %v2180_v6 = vpop.eup %2179  ;;  %2197 = vrcp.f32 %v701_v49  ;;  %v699_v46 = vadd.f32 1.0, %v2178_v43 }
 0x12f   : > { %v2182_v48 = vpop.eup %2181  ;;  %2199 = vrcp.f32 %v700_v40  ;;  %v827_v9 = vpack.c.bf16 %v787_v44, %v786_v59  ;;  %v792_v5 = vmul.f32 %v2180_v6, %v2679_v37 }
 0x130   : > { %v2184_v52 = vpop.eup %2183  ;;  %2201 = vrcp.f32 %v699_v46  ;;  %v704_v20 = vadd.f32 1.0, %v2182_v48 }
 0x131   : > { %v2186_v53 = vpop.eup %2185  ;;  %1973 = vmatprep.mubr.bf16.mxu1 %v827_v9  ;;  %v790_v61 = vmul.f32 %v2184_v52, %v2686_v47 }
 0x132   : > { %v2188_v0 = vpop.eup %2187  ;;  %v702_v11 = vadd.f32 1.0, %v2186_v53 }
 0x133   : > { %v2190_v34 = vpop.eup %2189  ;;  %1974 = vmatmul.mubr.bf16.gmra.mxu1 %v828_v55  ;;  %v793_v1 = vmul.f32 %v2188_v0, %v2690_v3 }
 0x134   : > { %v2192_v28 = vpop.eup %2191  ;;  %v705_v56 = vadd.f32 1.0, %v2190_v34  ;;  %2203 = vrcp.f32 %v702_v11 }
 0x135   : > { %v2194_v57 = vpop.eup %2193  ;;  %v791_v4 = vmul.f32 %v2192_v28, %v2694_v63  ;;  %v830_v29 = vpack.c.bf16 %v793_v1, %v792_v5 }
 0x136   : > { %2205 = vrcp.f32 %v705_v56  ;;  %v703_v2 = vadd.f32 1.0, %v2194_v57 }
 0x137   : > { %2207 = vrcp.f32 %v704_v20  ;;  %v829_v24 = vpack.c.bf16 %v791_v4, %v790_v61 }
 0x138   : > { %2209 = vrcp.f32 %v703_v2 }
 0x139   : > { %1977 = vmatprep.mubr.bf16.mxu1 %v829_v24  ;;  %v2196_v39 = vpop.eup %2195 }
 0x13a   : > { %v794_v3 = vmul.f32 %v2196_v39, %v2707_v21 }
 0x13b   : > { %v2198_v8 = vpop.eup %2197  ;;  %1978 = vmatmul.mubr.bf16.gmra.mxu1 %v830_v29 }
 0x13c   : > { %v2200_v10 = vpop.eup %2199  ;;  %v797_v47 = vmul.f32 %v2198_v8, %v2711_v33 }
 0x13d   : > { %v2202_v13 = vpop.eup %2201  ;;  %v796_v16 = vmul.f32 %v2200_v10, %v2701_v14  ;;  %v2064_v14 = vld [vmem:[%s3195_s5 + $0x64] ss:$8 sps:$4 sm:$0xff]  }
 0x13e   : > { %v795_v63 = vmul.f32 %v2202_v13, %v2715_v42  ;;  %1400 = vmatprep.subr.bf16.mxu0 %v2064_v14  ;;  %1990 = vmatprep.subr.bf16.mxu1 %v2064_v14 }
 0x13f   : > { %v832_v37 = vpack.c.bf16 %v797_v47, %v796_v16  ;;  %1401 = vmatpush1.bf16.msra.mxu0 %v2062_v30  ;;  %1998 = vmatpush1.bf16.msra.mxu1 %v2062_v30 }
 0x140   : > { %v831_v17 = vpack.c.bf16 %v795_v63, %v794_v3 }
 0x141   : > { %v2204_v18 = vpop.eup %2203 }
 0x142   : > { %1981 = vmatprep.mubr.bf16.mxu1 %v831_v17  ;;  %v798_v26 = vmul.f32 %v2204_v18, %v2727_v58  ;;  %v2065_v58 = vld [vmem:[%s3195_s5 + $0x50] ss:$8 sps:$4 sm:$0xff]  }
 0x143   : > { %v2206_v22 = vpop.eup %2205  ;;  %1982 = vmatmul.mubr.bf16.gmra.mxu1 %v832_v37 }
 0x144   : > { %v2208_v23 = vpop.eup %2207  ;;  %v801_v60 = vmul.f32 %v2206_v22, %v2731_v7  ;;  %v2070_v7 = vld [vmem:[%s3195_s5 + $0x44] ss:$8 sps:$4 sm:$0xff]  }
 0x145   : > { %v2210_v25 = vpop.eup %2209  ;;  %v800_v21 = vmul.f32 %v2208_v23, %v2720_v51  ;;  %v2067_v51 = vld [vmem:[%s3195_s5 + $0x54] ss:$8 sps:$4 sm:$0xff]  }
 0x146   : > { %v799_v33 = vmul.f32 %v2210_v25, %v2735_v19  ;;  %1402 = vmatprep.subr.bf16.mxu0 %v2067_v51  ;;  %1991 = vmatprep.subr.bf16.mxu1 %v2067_v51  ;;  %v2068_v19 = vld [vmem:[%s3195_s5 + $0x40] ss:$8 sps:$4 sm:$0xff]  }
 0x147   : > { %v834_v42 = vpack.c.bf16 %v801_v60, %v800_v21  ;;  %1403 = vmatpush1.bf16.msra.mxu0 %v2065_v58  ;;  %1999 = vmatpush1.bf16.msra.mxu1 %v2065_v58 }
 0x148   : > { %v833_v27 = vpack.c.bf16 %v799_v33, %v798_v26  ;;  %1404 = vmatprep.subr.bf16.mxu0 %v2070_v7  ;;  %1992 = vmatprep.subr.bf16.mxu1 %v2070_v7 }
 0x14a   : > { %1985 = vmatprep.mubr.bf16.mxu1 %v833_v27 }
 0x14b   : > { %1986 = vmatmul.mubr.bf16.gmra.mxu1 %v834_v42  ;;  %1405 = vmatpush1.bf16.msra.mxu0 %v2068_v19 }
 0x14c   : > { %2000 = vmatpush1.bf16.msra.mxu1 %v2068_v19  ;;  %1406 = vmatprep.subr.bf16.mxu0 %v2073_v31 }
 0x14d   : > { %1993 = vmatprep.subr.bf16.mxu1 %v2073_v31  ;;  %1520 = vmatprep.mubr.bf16.mxu1 %v2401_v38 }
 0x14f   : > { %1407 = vmatpush1.bf16.msra.mxu0 %v2071_v62 }
 0x150   : > { %2001 = vmatpush1.bf16.msra.mxu1 %v2071_v62  ;;  %1408 = vmatprep.subr.bf16.mxu0 %v2076_v32 }
 0x151   : > { %1994 = vmatprep.subr.bf16.mxu1 %v2076_v32 }
 0x153   : > { %1409 = vmatpush1.bf16.msra.mxu0 %v2074_v12 }
 0x154   : > { %2002 = vmatpush1.bf16.msra.mxu1 %v2074_v12  ;;  %1410 = vmatprep.subr.bf16.mxu0 %v2079_v15 }
 0x155   : > { %1995 = vmatprep.subr.bf16.mxu1 %v2079_v15 }
 0x157   : > { %1411 = vmatpush1.bf16.msra.mxu0 %v2077_v35 }
 0x158   : > { %2003 = vmatpush1.bf16.msra.mxu1 %v2077_v35  ;;  %1412 = vmatprep.subr.bf16.mxu0 %v2082_v54 }
 0x159   : > { %1996 = vmatprep.subr.bf16.mxu1 %v2082_v54 }
 0x15b   : > { %1413 = vmatpush1.bf16.msra.mxu0 %v2080_v36 }
 0x15c   : > { %2004 = vmatpush1.bf16.msra.mxu1 %v2080_v36 }
 0x1d2   : > { %v1959_v40 = vpop.f32.mrf.mxu1 }
 0x1d3   : > { %v2811_v45 = vadd.f32 %v1959_v40, %v2805_v41 }
 0x1d4   : > { %v923_v49 = vpop.f32.mrf.mxu1 }
 0x1d5   : > { %v2808_v43 = vadd.f32 %v2805_v41, %v923_v49  ;;  %v1803_v52 = vmul.f32 -1.442695, %v2811_v45 }
 0x1d6   : > { %v1960_v59 = vpop.f32.mrf.mxu1 }
 0x1d7   : > { %v1801_v44 = vmul.f32 -1.442695, %v2808_v43  ;;  %v2815_v6 = vadd.f32 %v1960_v59, %v2805_v41 }
 0x1d8   : > { %v926_v46 = vpop.f32.mrf.mxu1 }
 0x1d9   : > { %2211 = vpow2.f32 %v1801_v44  ;;  %v1804_v48 = vmul.f32 -1.442695, %v2815_v6  ;;  %v2819_v50 = vadd.f32 %v2805_v41, %v926_v46 }
 0x1db   : > { %v1963_v9 = vpop.f32.mrf.mxu1  ;;  %v1802_v53 = vmul.f32 -1.442695, %v2819_v50  ;;  %2213 = vpow2.f32 %v1804_v48 }
 0x1dc   : > { %v2830_v28 = vadd.f32 %v1963_v9, %v2805_v41 }
 0x1dd   : > { %v939_v55 = vpop.f32.mrf.mxu1  ;;  %2215 = vpow2.f32 %v1802_v53 }
 0x1de   : > { %v2824_v0 = vadd.f32 %v2805_v41, %v939_v55  ;;  %2217 = vpow2.f32 %v1803_v52  ;;  %v1807_v5 = vmul.f32 -1.442695, %v2830_v28 }
 0x1df   : > { %v1964_v11 = vpop.f32.mrf.mxu1 }
 0x1e0   : > { %v1805_v56 = vmul.f32 -1.442695, %v2824_v0  ;;  %v2835_v1 = vadd.f32 %v1964_v11, %v2805_v41 }
 0x1e1   : > { %v942_v34 = vpop.f32.mrf.mxu1 }
 0x1e2   : > { %v2827_v20 = vadd.f32 %v2805_v41, %v942_v34  ;;  %v1808_v39 = vmul.f32 -1.442695, %v2835_v1 }
 0x1e3   : > { %v1967_v57 = vpop.f32.mrf.mxu1 }
 0x1e4   : > { %v1806_v61 = vmul.f32 -1.442695, %v2827_v20  ;;  %v2861_v62 = vadd.f32 %v1967_v57, %v2805_v41 }
 0x1e5   : > { %v955_v4 = vpop.f32.mrf.mxu1 }
 0x1e6   : > { %2219 = vpow2.f32 %v1806_v61  ;;  %v2212_v2 = vpop.eup %2211  ;;  %v2840_v8 = vadd.f32 %v2805_v41, %v955_v4  ;;  %v1811_v48 = vmul.f32 -1.442695, %v2861_v62 }
 0x1e7   : > { %2221 = vpow2.f32 %v1805_v56  ;;  %v1968_v24 = vpop.f32.mrf.mxu1  ;;  %v1146_v29 = vadd.f32 1.0, %v2212_v2 }
 0x1e8   : > { %v2214_v13 = vpop.eup %2213  ;;  %2223 = vpow2.f32 %v1807_v5  ;;  %v1809_v37 = vmul.f32 -1.442695, %v2840_v8  ;;  %v2857_v51 = vadd.f32 %v1968_v24, %v2805_v41 }
 0x1e9   : > { %v958_v10 = vpop.f32.mrf.mxu1  ;;  %2225 = vrcp.f32 %v1146_v29  ;;  %v1149_v22 = vadd.f32 1.0, %v2214_v13 }
 0x1ea   : > { %v2216_v47 = vpop.eup %2215  ;;  %v2843_v3 = vadd.f32 %v2805_v41, %v958_v10  ;;  %2227 = vpow2.f32 %v1808_v39  ;;  %v1812_v54 = vmul.f32 -1.442695, %v2857_v51 }
 0x1eb   : > { %v2845_v63 = vpop.f32.mrf.mxu1  ;;  %v1147_v16 = vadd.f32 1.0, %v2216_v47  ;;  %v2218_v17 = vpop.eup %2217 }
 0x1ec   : > { %v1810_v23 = vmul.f32 -1.442695, %v2843_v3  ;;  %v1148_v60 = vadd.f32 1.0, %v2218_v17 }
 0x1ed   : > { %v971_v18 = vpop.f32.mrf.mxu1  ;;  %2229 = vrcp.f32 %v1147_v16 }
 0x1ee   : > { %2231 = vpow2.f32 %v1809_v37  ;;  %v2871_v49 = vadd.f32 %v2805_v41, %v971_v18 }
 0x1ef   : > { %v2849_v25 = vpop.f32.mrf.mxu1  ;;  %2233 = vrcp.f32 %v1149_v22 }
 0x1f0   : > { %2235 = vpow2.f32 %v1810_v23  ;;  %v1813_v57 = vmul.f32 -1.442695, %v2871_v49 }
 0x1f1   : > { %v974_v26 = vpop.f32.mrf.mxu1  ;;  %2237 = vrcp.f32 %v1148_v60 }
 0x1f2   : > { %v2877_v52 = vadd.f32 %v2805_v41, %v974_v26 }
 0x1f3   : > { %v2220_v33 = vpop.eup %2219  ;;  %v1975_v21 = vpop.f32.mrf.mxu1 }
 0x1f4   : > { %v2222_v27 = vpop.eup %2221  ;;  %v2852_v42 = vadd.f32 %v1975_v21, %v2805_v41  ;;  %v1151_v30 = vadd.f32 1.0, %v2220_v33  ;;  %v1814_v5 = vmul.f32 -1.442695, %v2877_v52 }
 0x1f5   : > { %v2854_v14 = vpop.f32.mrf.mxu1  ;;  %v1150_v7 = vadd.f32 1.0, %v2222_v27  ;;  %v2224_v31 = vpop.eup %2223 }
 0x1f6   : > { %v1819_v58 = vmul.f32 -1.442695, %v2852_v42  ;;  %v2226_v12 = vpop.eup %2225  ;;  %v1152_v9 = vadd.f32 1.0, %v2224_v31 }
 0x1f7   : > { %v1976_v19 = vpop.f32.mrf.mxu1  ;;  %v2228_v35 = vpop.eup %2227  ;;  %v1242_v44 = vmul.f32 %v2226_v12, %v2808_v43 }
 0x1f8   : > { %2239 = vpow2.f32 %v1819_v58  ;;  %v2864_v32 = vadd.f32 %v1976_v19, %v2805_v41  ;;  %v1153_v34 = vadd.f32 1.0, %v2228_v35  ;;  %v2908_v58 = vadd.f32 %v2845_v63, %v2805_v41 }
 0x1f9   : > { %v2866_v15 = vpop.f32.mrf.mxu1  ;;  %2241 = vrcp.f32 %v1151_v30 }
 0x1fa   : > { %v1820_v36 = vmul.f32 -1.442695, %v2864_v32  ;;  %v2230_v40 = vpop.eup %2229  ;;  %2243 = vrcp.f32 %v1150_v7 }
 0x1fb   : > { %v1979_v59 = vpop.f32.mrf.mxu1  ;;  %v1243_v46 = vmul.f32 %v2230_v40, %v2819_v50  ;;  %v2232_v55 = vpop.eup %2231 }
 0x1fc   : > { %2245 = vpow2.f32 %v1820_v36  ;;  %v2234_v56 = vpop.eup %2233  ;;  %v1154_v10 = vadd.f32 1.0, %v2232_v55  ;;  %v2894_v16 = vadd.f32 %v1979_v59, %v2805_v41  ;;  %v1815_v59 = vmul.f32 -1.442695, %v2908_v58 }
 0x1fd   : > { %v1003_v53 = vpop.f32.mrf.mxu1  ;;  %v1291_v11 = vpack.c.bf16 %v1243_v46, %v1242_v44  ;;  %2247 = vpow2.f32 %v1812_v54  ;;  %v2236_v50 = vpop.eup %2235  ;;  %v1245_v39 = vmul.f32 %v2234_v56, %v2815_v6  ;;  %v2902_v6 = vadd.f32 %v2849_v25, %v2805_v41 }
 0x1fe   : > { %v2881_v61 = vadd.f32 %v2805_v41, %v1003_v53  ;;  %2249 = vpow2.f32 %v1811_v48  ;;  %v2238_v2 = vpop.eup %2237  ;;  %v1155_v47 = vadd.f32 1.0, %v2236_v50  ;;  %v1823_v27 = vmul.f32 -1.442695, %v2894_v16 }
 0x1ff   : > { %v1980_v43 = vpop.f32.mrf.mxu1  ;;  %1431 = vmatmul.mubr.bf16.vlgmr.msra.gmra.mxu0 %v1291_v11  ;;  %2251 = vrcp.f32 %v1152_v9  ;;  %v1244_v37 = vmul.f32 %v2238_v2, %v2811_v45  ;;  %v1816_v7 = vmul.f32 -1.442695, %v2902_v6  ;;  %v2930_v53 = vadd.f32 %v2805_v41, %v2866_v15 }
 0x200   : > { %v2884_v4 = vadd.f32 %v1980_v43, %v2805_v41  ;;  %v1821_v24 = vmul.f32 -1.442695, %v2881_v61  ;;  %1440 = vmatprep.mubr.bf16.mxu0 %v2401_v38  ;;  %2253 = vrcp.f32 %v1153_v34 }
 0x201   : > { %v1006_v29 = vpop.f32.mrf.mxu1  ;;  %2255 = vpow2.f32 %v1813_v57  ;;  %v1292_v33 = vpack.c.bf16 %v1245_v39, %v1244_v37 }
 0x202   : > { %v2891_v13 = vadd.f32 %v2805_v41, %v1006_v29  ;;  %2257 = vpow2.f32 %v1821_v24  ;;  %v1824_v18 = vmul.f32 -1.442695, %v2884_v4 }
 0x203   : > { %v2896_v17 = vpop.f32.mrf.mxu1  ;;  %2259 = vpow2.f32 %v1814_v5  ;;  %v1818_v5 = vmul.f32 -1.442695, %v2930_v53 }
 0x204   : > { %v1822_v23 = vmul.f32 -1.442695, %v2891_v13  ;;  %2261 = vrcp.f32 %v1154_v10  ;;  %v2942_v10 = vadd.f32 %v2896_v17, %v2805_v41 }
 0x205   : > { %v2240_v22 = vpop.eup %2239  ;;  %v1019_v60 = vpop.f32.mrf.mxu1  ;;  %2263 = vrcp.f32 %v1155_v47 }
 0x206   : > { %v1164_v26 = vadd.f32 1.0, %v2240_v22  ;;  %v2242_v21 = vpop.eup %2241  ;;  %2265 = vpow2.f32 %v1824_v18  ;;  %v2917_v63 = vadd.f32 %v2805_v41, %v1019_v60  ;;  %v1827_v17 = vmul.f32 -1.442695, %v2942_v10 }
 0x207   : > { %v1984_v45 = vpop.f32.mrf.mxu1  ;;  %v2244_v30 = vpop.eup %2243  ;;  %1441 = vmatmul.mubr.bf16.gmra.mxu0 %v1292_v33  ;;  %2267 = vpow2.f32 %v1822_v23  ;;  %v1247_v31 = vmul.f32 %v2242_v21, %v2827_v20  ;;  %v2925_v20 = vadd.f32 %v2805_v41, %v2854_v14 }
 0x208   : > { %1450 = vmatprep.mubr.bf16.mxu0 %v2401_v38  ;;  %2269 = vrcp.f32 %v1164_v26  ;;  %v1246_v40 = vmul.f32 %v2244_v30, %v2824_v0  ;;  %v1825_v34 = vmul.f32 -1.442695, %v2917_v63  ;;  %v2934_v14 = vadd.f32 %v1984_v45, %v2805_v41 }
 0x209   : > { %v2246_v25 = vpop.eup %2245  ;;  %v1022_v19 = vpop.f32.mrf.mxu1  ;;  %2271 = vpow2.f32 %v1823_v27  ;;  %v1817_v50 = vmul.f32 -1.442695, %v2925_v20 }
 0x20a   : > { %v1165_v12 = vadd.f32 1.0, %v2246_v25  ;;  %v2914_v35 = vadd.f32 %v2805_v41, %v1022_v19  ;;  %v2248_v54 = vpop.eup %2247  ;;  %v1293_v11 = vpack.c.bf16 %v1247_v31, %v1246_v40  ;;  %v1828_v18 = vmul.f32 -1.442695, %v2934_v14 }
 0x20b   : > { %v2919_v36 = vpop.f32.mrf.mxu1  ;;  %v2250_v44 = vpop.eup %2249  ;;  %v1157_v9 = vadd.f32 1.0, %v2248_v54 }
 0x20c   : > { %2273 = vrcp.f32 %v1165_v12  ;;  %v1826_v46 = vmul.f32 -1.442695, %v2914_v35  ;;  %v2252_v48 = vpop.eup %2251  ;;  %v1156_v57 = vadd.f32 1.0, %v2250_v44 }
 0x20d   : > { %2275 = vpow2.f32 %v1816_v7  ;;  %v1035_v55 = vpop.f32.mrf.mxu1  ;;  %v2254_v0 = vpop.eup %2253  ;;  %v1248_v37 = vmul.f32 %v2252_v48, %v2830_v28 }
 0x20e   : > { %v2256_v56 = vpop.eup %2255  ;;  %2277 = vpow2.f32 %v1815_v59  ;;  %v1249_v2 = vmul.f32 %v2254_v0, %v2835_v1  ;;  %v2955_v40 = vadd.f32 %v2805_v41, %v1035_v55 }
 0x20f   : > { %1451 = vmatmul.mubr.bf16.gmra.mxu0 %v1293_v11  ;;  %v2258_v43 = vpop.eup %2257  ;;  %2279 = vpow2.f32 %v1826_v46  ;;  %v1988_v24 = vpop.f32.mrf.mxu1  ;;  %v1158_v45 = vadd.f32 1.0, %v2256_v56 }
 0x210   : > { %1460 = vmatprep.mubr.bf16.mxu0 %v2401_v38  ;;  %v2260_v15 = vpop.eup %2259  ;;  %2281 = vrcp.f32 %v1157_v9  ;;  %v1166_v39 = vadd.f32 1.0, %v2258_v43  ;;  %v1294_v26 = vpack.c.bf16 %v1249_v2, %v1248_v37  ;;  %v2962_v56 = vadd.f32 %v1988_v24, %v2805_v41 }
 0x211   : > { %v2262_v29 = vpop.eup %2261  ;;  %2283 = vpow2.f32 %v1825_v34  ;;  %v1159_v23 = vadd.f32 1.0, %v2260_v15  ;;  %v1038_v60 = vpop.f32.mrf.mxu1  ;;  %v2968_v2 = vadd.f32 %v2919_v36, %v2805_v41 }
 0x212   : > { %v2264_v47 = vpop.eup %2263  ;;  %2285 = vrcp.f32 %v1156_v57  ;;  %v2948_v25 = vadd.f32 %v2805_v41, %v1038_v60  ;;  %v1250_v59 = vmul.f32 %v2262_v29, %v2840_v8 }
 0x213   : > { %v2266_v22 = vpop.eup %2265  ;;  %2287 = vpow2.f32 %v1817_v50  ;;  %v1251_v7 = vmul.f32 %v2264_v47, %v2843_v3  ;;  %v1831_v41 = vmul.f32 -1.442695, %v2968_v2 }
 0x214   : > { %v2268_v1 = vpop.eup %2267  ;;  %2289 = vpow2.f32 %v1818_v5  ;;  %v1169_v30 = vadd.f32 1.0, %v2266_v22  ;;  %v1830_v48 = vmul.f32 -1.442695, %v2948_v25 }
 0x215   : > { %v2270_v33 = vpop.eup %2269  ;;  %2291 = vrcp.f32 %v1166_v39  ;;  %v1167_v21 = vadd.f32 1.0, %v2268_v1  ;;  %v1832_v39 = vmul.f32 -1.442695, %v2962_v56 }
 0x216   : > { %v2272_v27 = vpop.eup %2271  ;;  %2293 = vpow2.f32 %v1828_v18  ;;  %v1260_v19 = vmul.f32 %v2270_v33, %v2852_v42  ;;  %v1295_v42 = vpack.c.bf16 %v1251_v7, %v1250_v59 }
 0x217   : > { %1461 = vmatmul.mubr.bf16.gmra.mxu0 %v1294_v26  ;;  %2295 = vrcp.f32 %v1167_v21  ;;  %v1168_v54 = vadd.f32 1.0, %v2272_v27 }
 0x218   : > { %1470 = vmatprep.mubr.bf16.mxu0 %v2401_v38  ;;  %2297 = vrcp.f32 %v1159_v23 }
 0x219   : > { %v2274_v28 = vpop.eup %2273  ;;  %2299 = vpow2.f32 %v1827_v17 }
 0x21a   : > { %v1261_v31 = vmul.f32 %v2274_v28, %v2864_v32  ;;  %v2276_v12 = vpop.eup %2275  ;;  %2301 = vrcp.f32 %v1158_v45  ;;  %v1829_v32 = vmul.f32 -1.442695, %v2955_v40 }
 0x21b   : > { %v2278_v46 = vpop.eup %2277  ;;  %2303 = vrcp.f32 %v1169_v30  ;;  %v1161_v9 = vadd.f32 1.0, %v2276_v12 }
 0x21c   : > { %v1300_v44 = vpack.c.bf16 %v1261_v31, %v1260_v19  ;;  %v2280_v3 = vpop.eup %2279  ;;  %2305 = vrcp.f32 %v1168_v54  ;;  %v1160_v0 = vadd.f32 1.0, %v2278_v46 }
 0x21d   : > { %v2282_v11 = vpop.eup %2281  ;;  %v1171_v34 = vadd.f32 1.0, %v2280_v3  ;;  %2307 = vpow2.f32 %v1830_v48 }
 0x21e   : > { %1521 = vmatmul.mubr.bf16.vlgmr.msra.gmra.mxu1 %v1300_v44  ;;  %v2284_v55 = vpop.eup %2283  ;;  %v1253_v43 = vmul.f32 %v2282_v11, %v2857_v51  ;;  %2309 = vrcp.f32 %v1161_v9 }
 0x21f   : > { %1530 = vmatprep.mubr.bf16.mxu1 %v2401_v38  ;;  %1471 = vmatmul.mubr.bf16.gmra.mxu0 %v1295_v42  ;;  %v2286_v8 = vpop.eup %2285  ;;  %v1170_v15 = vadd.f32 1.0, %v2284_v55  ;;  %2311 = vpow2.f32 %v1829_v32 }
 0x220   : > { %1480 = vmatprep.mubr.bf16.mxu0 %v2401_v38  ;;  %v2288_v57 = vpop.eup %2287  ;;  %v1252_v29 = vmul.f32 %v2286_v8, %v2861_v62  ;;  %2313 = vrcp.f32 %v1160_v0 }
 0x221   : > { %v2290_v50 = vpop.eup %2289  ;;  %2315 = vrcp.f32 %v1171_v34  ;;  %v1162_v23 = vadd.f32 1.0, %v2288_v57 }
 0x222   : > { %v2292_v5 = vpop.eup %2291  ;;  %v1163_v37 = vadd.f32 1.0, %v2290_v50  ;;  %v1296_v18 = vpack.c.bf16 %v1253_v43, %v1252_v29  ;;  %2317 = vrcp.f32 %v1170_v15 }
 0x223   : > { %v2294_v24 = vpop.eup %2293  ;;  %v1262_v22 = vmul.f32 %v2292_v5, %v2881_v61  ;;  %2319 = vpow2.f32 %v1832_v39 }
 0x224   : > { %v2296_v47 = vpop.eup %2295  ;;  %v1173_v60 = vadd.f32 1.0, %v2294_v24  ;;  %2321 = vrcp.f32 %v1163_v37 }
 0x225   : > { %v2298_v51 = vpop.eup %2297  ;;  %v1263_v1 = vmul.f32 %v2296_v47, %v2891_v13  ;;  %2323 = vpow2.f32 %v1831_v41  ;;  %v1308_v47 = vlaneseq }
 0x226   : > { %v2300_v36 = vpop.eup %2299  ;;  %v1255_v21 = vmul.f32 %v2298_v51, %v2877_v52  ;;  %2325 = vrcp.f32 %v1162_v23 }
 0x227   : > { %1481 = vmatmul.mubr.bf16.gmra.mxu0 %v1296_v18  ;;  %v2302_v62 = vpop.eup %2301  ;;  %v1301_v26 = vpack.c.bf16 %v1263_v1, %v1262_v22  ;;  %v1172_v17 = vadd.f32 1.0, %v2300_v36  ;;  %2327 = vrcp.f32 %v1173_v60  ;;  %v1309_v37 = vshrl.u32 %v1308_v47, 7 }
 0x228   : > { %1490 = vmatprep.mubr.bf16.mxu0 %v2401_v38  ;;  %v2304_v33 = vpop.eup %2303  ;;  %v1254_v13 = vmul.f32 %v2302_v62, %v2871_v49 }
 0x229   : > { %1531 = vmatmul.mubr.bf16.gmra.mxu1 %v1301_v26  ;;  %v2306_v61 = vpop.eup %2305  ;;  %v1265_v27 = vmul.f32 %v2304_v33, %v2884_v4  ;;  %2329 = vrcp.f32 %v1172_v17  ;;  %v1310_v18 = vsub.s32 0, %v1309_v37 }
 0x22a   : > { %1540 = vmatprep.mubr.bf16.mxu1 %v2401_v38  ;;  %v2308_v45 = vpop.eup %2307  ;;  %v1297_v28 = vpack.c.bf16 %v1255_v21, %v1254_v13  ;;  %v1264_v7 = vmul.f32 %v2306_v61, %v2894_v16 }
 0x22b   : > { %v2310_v30 = vpop.eup %2309  ;;  %v1175_v31 = vadd.f32 1.0, %v2308_v45 }
 0x22c   : > { %v2312_v52 = vpop.eup %2311  ;;  %v1302_v12 = vpack.c.bf16 %v1265_v27, %v1264_v7  ;;  %v1257_v54 = vmul.f32 %v2310_v30, %v2902_v6 }
 0x22d   : > { %v2314_v19 = vpop.eup %2313  ;;  %v1174_v59 = vadd.f32 1.0, %v2312_v52  ;;  %2331 = vrcp.f32 %v1175_v31 }
 0x22e   : > { %v2316_v49 = vpop.eup %2315  ;;  %v1256_v44 = vmul.f32 %v2314_v19, %v2908_v58 }
 0x22f   : > { %1491 = vmatmul.mubr.bf16.gmra.mxu0 %v1297_v28  ;;  %v2318_v4 = vpop.eup %2317  ;;  %v1267_v16 = vmul.f32 %v2316_v49, %v2914_v35  ;;  %2333 = vrcp.f32 %v1174_v59 }
 0x230   : > { %1500 = vmatprep.mubr.bf16.mxu0 %v2401_v38  ;;  %v2320_v46 = vpop.eup %2319  ;;  %v1298_v48 = vpack.c.bf16 %v1257_v54, %v1256_v44  ;;  %v1266_v9 = vmul.f32 %v2318_v4, %v2917_v63 }
 0x231   : > { %1541 = vmatmul.mubr.bf16.gmra.mxu1 %v1302_v12  ;;  %v2322_v3 = vpop.eup %2321  ;;  %v1177_v6 = vadd.f32 1.0, %v2320_v46 }
 0x232   : > { %1550 = vmatprep.mubr.bf16.mxu1 %v2401_v38  ;;  %v2324_v42 = vpop.eup %2323  ;;  %v1303_v32 = vpack.c.bf16 %v1267_v16, %v1266_v9  ;;  %v1259_v58 = vmul.f32 %v2322_v3, %v2930_v53 }
 0x233   : > { %v2326_v11 = vpop.eup %2325  ;;  %v1176_v0 = vadd.f32 1.0, %v2324_v42  ;;  %2335 = vrcp.f32 %v1177_v6 }
 0x234   : > { %v2328_v55 = vpop.eup %2327  ;;  %v1258_v8 = vmul.f32 %v2326_v11, %v2925_v20 }
 0x235   : > { %v1269_v63 = vmul.f32 %v2328_v55, %v2934_v14  ;;  %2337 = vrcp.f32 %v1176_v0 }
 0x236   : > { %v2330_v35 = vpop.eup %2329  ;;  %v1299_v34 = vpack.c.bf16 %v1259_v58, %v1258_v8 }
 0x237   : > { %1501 = vmatmul.mubr.bf16.gmra.mxu0 %v1298_v48  ;;  %v1268_v57 = vmul.f32 %v2330_v35, %v2942_v10 }
 0x238   : > { %1510 = vmatprep.mubr.bf16.mxu0 %v2401_v38 }
 0x239   : > { %1551 = vmatmul.mubr.bf16.gmra.mxu1 %v1303_v32  ;;  %v1304_v43 = vpack.c.bf16 %v1269_v63, %v1268_v57 }
 0x23a   : > { %1560 = vmatprep.mubr.bf16.mxu1 %v2401_v38  ;;  %v2332_v50 = vpop.eup %2331 }
 0x23b   : > { %v1271_v53 = vmul.f32 %v2332_v50, %v2948_v25  ;;  %v1290_v25 = vld [vmem:[%s3196_s6] sm:$0x3] }
 0x23c   : > { %v2334_v15 = vpop.eup %2333  ;;  %v3005_v51 = vrot.slane %v1290_v25, %v1310_v18 }
 0x23d   : > { %v1270_v20 = vmul.f32 %v2334_v15, %v2955_v40  ;;  %v1314_v40 = vsub.s32 1, %v1309_v37 }
 0x23f   : > { %1511 = vmatmul.mubr.bf16.gmra.mxu0 %v1299_v34  ;;  %v1305_v5 = vpack.c.bf16 %v1271_v53, %v1270_v20 }
 0x240   : > { %v2336_v14 = vpop.eup %2335 }
 0x241   : > { %1561 = vmatmul.mubr.bf16.gmra.mxu1 %v1304_v43  ;;  %v1273_v10 = vmul.f32 %v2336_v14, %v2962_v56 }
 0x242   : > { %1570 = vmatprep.mubr.bf16.mxu1 %v2401_v38  ;;  %v2338_v29 = vpop.eup %2337 }
 0x243   : > { %v1272_v24 = vmul.f32 %v2338_v29, %v2968_v2 }
 0x245   : > { %v1306_v39 = vpack.c.bf16 %v1273_v10, %v1272_v24 }
 0x249   : > { %1571 = vmatmul.mubr.bf16.gmra.mxu1 %v1305_v5 }
 0x24a   : > { %1580 = vmatprep.mubr.bf16.mxu1 %v2401_v38  ;;  %v3007_v38 = vrot.slane %v1290_v25, %v1314_v40 }
 0x251   : > { %1581 = vmatmul.mubr.bf16.gmra.mxu1 %v1306_v39 }
 0x2bf   : > { %v1432_v56 = vpop.f32.mrf.mxu0 }
 0x2c0   : > { %v1433_v2 = vadd.f32 %v1432_v56, %v3005_v51 }
 0x2c1   : > { %v1434_v22 = vpop.f32.mrf.mxu0 }
 0x2c2   : > { %1591 = vst [vmem:[%s3010_s9] sm:$0xff] %v1433_v2  ;;  %v1435_v1 = vadd.f32 %v1434_v22, %v3007_v38 }
 0x2c3   : > { %v1436_v41 = vpop.f32.mrf.mxu0 }
 0x2c4   : > { %1592 = vst [vmem:[%s3010_s9 + $0x8] sm:$0xff] %v1435_v1  ;;  %v1437_v36 = vadd.f32 %v1436_v41, %v3005_v51 }
 0x2c5   : > { %v1438_v23 = vpop.f32.mrf.mxu0 }
 0x2c6   : > { %1593 = vst [vmem:[%s3010_s9 + $0x10] sm:$0xff] %v1437_v36  ;;  %v1439_v62 = vadd.f32 %v1438_v23, %v3007_v38 }
 0x2c7   : > { %v1442_v60 = vpop.f32.mrf.mxu0 }
 0x2c8   : > { %1594 = vst [vmem:[%s3010_s9 + $0x18] sm:$0xff] %v1439_v62  ;;  %v1443_v26 = vadd.f32 %v1442_v60, %v3005_v51 }
 0x2c9   : > { %v1444_v33 = vpop.f32.mrf.mxu0 }
 0x2ca   : > { %1595 = vst [vmem:[%s3010_s9 + $0x20] sm:$0xff] %v1443_v26  ;;  %v1445_v21 = vadd.f32 %v1444_v33, %v3007_v38 }
 0x2cb   : > { %v1446_v17 = vpop.f32.mrf.mxu0 }
 0x2cc   : > { %1596 = vst [vmem:[%s3010_s9 + $0x28] sm:$0xff] %v1445_v21  ;;  %v1447_v61 = vadd.f32 %v1446_v17, %v3005_v51 }
 0x2cd   : > { %v1448_v13 = vpop.f32.mrf.mxu0 }
 0x2ce   : > { %1597 = vst [vmem:[%s3010_s9 + $0x30] sm:$0xff] %v1447_v61  ;;  %v1449_v27 = vadd.f32 %v1448_v13, %v3007_v38 }
 0x2cf   : > { %v1452_v45 = vpop.f32.mrf.mxu0 }
 0x2d0   : > { %1598 = vst [vmem:[%s3010_s9 + $0x38] sm:$0xff] %v1449_v27  ;;  %v1453_v28 = vadd.f32 %v1452_v45, %v3005_v51 }
 0x2d1   : > { %v1454_v30 = vpop.f32.mrf.mxu0 }
 0x2d2   : > { %1599 = vst [vmem:[%s3010_s9 + $0x40] sm:$0xff] %v1453_v28  ;;  %v1455_v7 = vadd.f32 %v1454_v30, %v3007_v38 }
 0x2d3   : > { %v1456_v52 = vpop.f32.mrf.mxu0 }
 0x2d4   : > { %1600 = vst [vmem:[%s3010_s9 + $0x48] sm:$0xff] %v1455_v7  ;;  %v1457_v19 = vadd.f32 %v1456_v52, %v3005_v51 }
 0x2d5   : > { %v1458_v31 = vpop.f32.mrf.mxu0 }
 0x2d6   : > { %1601 = vst [vmem:[%s3010_s9 + $0x50] sm:$0xff] %v1457_v19  ;;  %v1459_v12 = vadd.f32 %v1458_v31, %v3007_v38 }
 0x2d7   : > { %v1462_v49 = vpop.f32.mrf.mxu0 }
 0x2d8   : > { %1602 = vst [vmem:[%s3010_s9 + $0x58] sm:$0xff] %v1459_v12  ;;  %v1463_v54 = vadd.f32 %v1462_v49, %v3005_v51 }
 0x2d9   : > { %v1464_v59 = vpop.f32.mrf.mxu0 }
 0x2da   : > { %1603 = vst [vmem:[%s3010_s9 + $0x60] sm:$0xff] %v1463_v54  ;;  %v1465_v4 = vadd.f32 %v1464_v59, %v3007_v38 }
 0x2db   : > { %v1466_v44 = vpop.f32.mrf.mxu0 }
 0x2dc   : > { %1604 = vst [vmem:[%s3010_s9 + $0x68] sm:$0xff] %v1465_v4  ;;  %v1467_v16 = vadd.f32 %v1466_v44, %v3005_v51 }
 0x2dd   : > { %v1468_v46 = vpop.f32.mrf.mxu0 }
 0x2de   : > { %v1522_v48 = vpop.f32.mrf.mxu1  ;;  %1605 = vst [vmem:[%s3010_s9 + $0x70] sm:$0xff] %v1467_v16  ;;  %v1469_v3 = vadd.f32 %v1468_v46, %v3007_v38 }
 0x2df   : > { %v1523_v9 = vadd.f32 %v1522_v48, %v3005_v51  ;;  %v1472_v42 = vpop.f32.mrf.mxu0 }
 0x2e0   : > { %v1524_v11 = vpop.f32.mrf.mxu1  ;;  %1606 = vst [vmem:[%s3010_s9 + $0x78] sm:$0xff] %v1469_v3  ;;  %v1473_v6 = vadd.f32 %v1472_v42, %v3005_v51 }
 0x2e1   : > { %1627 = vst [vmem:[%s3010_s9 + $0x120] sm:$0xff] %v1523_v9  ;;  %v1525_v32 = vadd.f32 %v1524_v11, %v3007_v38  ;;  %v1474_v55 = vpop.f32.mrf.mxu0 }
 0x2e2   : > { %v1526_v58 = vpop.f32.mrf.mxu1  ;;  %1607 = vst [vmem:[%s3010_s9 + $0x80] sm:$0xff] %v1473_v6  ;;  %v1475_v0 = vadd.f32 %v1474_v55, %v3007_v38 }
 0x2e3   : > { %1628 = vst [vmem:[%s3010_s9 + $0x128] sm:$0xff] %v1525_v32  ;;  %v1527_v35 = vadd.f32 %v1526_v58, %v3005_v51  ;;  %v1476_v8 = vpop.f32.mrf.mxu0 }
 0x2e4   : > { %v1528_v63 = vpop.f32.mrf.mxu1  ;;  %1608 = vst [vmem:[%s3010_s9 + $0x88] sm:$0xff] %v1475_v0  ;;  %v1477_v34 = vadd.f32 %v1476_v8, %v3005_v51 }
 0x2e5   : > { %1629 = vst [vmem:[%s3010_s9 + $0x130] sm:$0xff] %v1527_v35  ;;  %v1529_v57 = vadd.f32 %v1528_v63, %v3007_v38  ;;  %v1478_v43 = vpop.f32.mrf.mxu0 }
 0x2e6   : > { %1609 = vst [vmem:[%s3010_s9 + $0x90] sm:$0xff] %v1477_v34  ;;  %v1479_v50 = vadd.f32 %v1478_v43, %v3007_v38 }
 0x2e7   : > { %1630 = vst [vmem:[%s3010_s9 + $0x138] sm:$0xff] %v1529_v57  ;;  %v1482_v15 = vpop.f32.mrf.mxu0 }
 0x2e8   : > { %1610 = vst [vmem:[%s3010_s9 + $0x98] sm:$0xff] %v1479_v50  ;;  %v1483_v53 = vadd.f32 %v1482_v15, %v3005_v51 }
 0x2e9   : > { %v1484_v20 = vpop.f32.mrf.mxu0  ;;  %v1532_v5 = vpop.f32.mrf.mxu1 }
 0x2ea   : > { %1611 = vst [vmem:[%s3010_s9 + $0xa0] sm:$0xff] %v1483_v53  ;;  %v1485_v14 = vadd.f32 %v1484_v20, %v3007_v38  ;;  %v1533_v29 = vadd.f32 %v1532_v5, %v3005_v51 }
 0x2eb   : > { %v1486_v10 = vpop.f32.mrf.mxu0  ;;  %v1534_v24 = vpop.f32.mrf.mxu1 }
 0x2ec   : > { %1612 = vst [vmem:[%s3010_s9 + $0xa8] sm:$0xff] %v1485_v14  ;;  %v1487_v39 = vadd.f32 %v1486_v10, %v3005_v51  ;;  %1631 = vst [vmem:[%s3010_s9 + $0x140] sm:$0xff] %v1533_v29  ;;  %v1535_v47 = vadd.f32 %v1534_v24, %v3007_v38 }
 0x2ed   : > { %v1488_v37 = vpop.f32.mrf.mxu0  ;;  %v1536_v18 = vpop.f32.mrf.mxu1 }
 0x2ee   : > { %1613 = vst [vmem:[%s3010_s9 + $0xb0] sm:$0xff] %v1487_v39  ;;  %v1489_v25 = vadd.f32 %v1488_v37, %v3007_v38  ;;  %1632 = vst [vmem:[%s3010_s9 + $0x148] sm:$0xff] %v1535_v47  ;;  %v1537_v40 = vadd.f32 %v1536_v18, %v3005_v51 }
 0x2ef   : > { %v1492_v56 = vpop.f32.mrf.mxu0  ;;  %v1538_v2 = vpop.f32.mrf.mxu1 }
 0x2f0   : > { %1614 = vst [vmem:[%s3010_s9 + $0xb8] sm:$0xff] %v1489_v25  ;;  %v1493_v22 = vadd.f32 %v1492_v56, %v3005_v51  ;;  %1633 = vst [vmem:[%s3010_s9 + $0x150] sm:$0xff] %v1537_v40  ;;  %v1539_v1 = vadd.f32 %v1538_v2, %v3007_v38 }
 0x2f1   : > { %v1494_v41 = vpop.f32.mrf.mxu0  ;;  %v1542_v36 = vpop.f32.mrf.mxu1 }
 0x2f2   : > { %1615 = vst [vmem:[%s3010_s9 + $0xc0] sm:$0xff] %v1493_v22  ;;  %v1495_v23 = vadd.f32 %v1494_v41, %v3007_v38  ;;  %1634 = vst [vmem:[%s3010_s9 + $0x158] sm:$0xff] %v1539_v1  ;;  %v1543_v62 = vadd.f32 %v1542_v36, %v3005_v51 }
 0x2f3   : > { %v1496_v60 = vpop.f32.mrf.mxu0  ;;  %v1544_v26 = vpop.f32.mrf.mxu1 }
 0x2f4   : > { %1616 = vst [vmem:[%s3010_s9 + $0xc8] sm:$0xff] %v1495_v23  ;;  %v1497_v33 = vadd.f32 %v1496_v60, %v3005_v51  ;;  %1635 = vst [vmem:[%s3010_s9 + $0x160] sm:$0xff] %v1543_v62  ;;  %v1545_v21 = vadd.f32 %v1544_v26, %v3007_v38 }
 0x2f5   : > { %v1498_v17 = vpop.f32.mrf.mxu0  ;;  %v1546_v61 = vpop.f32.mrf.mxu1 }
 0x2f6   : > { %1617 = vst [vmem:[%s3010_s9 + $0xd0] sm:$0xff] %v1497_v33  ;;  %v1499_v13 = vadd.f32 %v1498_v17, %v3007_v38  ;;  %1636 = vst [vmem:[%s3010_s9 + $0x168] sm:$0xff] %v1545_v21  ;;  %v1547_v27 = vadd.f32 %v1546_v61, %v3005_v51 }
 0x2f7   : > { %v1502_v45 = vpop.f32.mrf.mxu0  ;;  %v1548_v28 = vpop.f32.mrf.mxu1 }
 0x2f8   : > { %1618 = vst [vmem:[%s3010_s9 + $0xd8] sm:$0xff] %v1499_v13  ;;  %v1503_v30 = vadd.f32 %v1502_v45, %v3005_v51  ;;  %1637 = vst [vmem:[%s3010_s9 + $0x170] sm:$0xff] %v1547_v27  ;;  %v1549_v7 = vadd.f32 %v1548_v28, %v3007_v38 }
 0x2f9   : > { %v1504_v52 = vpop.f32.mrf.mxu0  ;;  %v1552_v19 = vpop.f32.mrf.mxu1 }
 0x2fa   : > { %1619 = vst [vmem:[%s3010_s9 + $0xe0] sm:$0xff] %v1503_v30  ;;  %v1505_v31 = vadd.f32 %v1504_v52, %v3007_v38  ;;  %1638 = vst [vmem:[%s3010_s9 + $0x178] sm:$0xff] %v1549_v7  ;;  %v1553_v12 = vadd.f32 %v1552_v19, %v3005_v51 }
 0x2fb   : > { %v1506_v49 = vpop.f32.mrf.mxu0  ;;  %v1554_v54 = vpop.f32.mrf.mxu1 }
 0x2fc   : > { %1620 = vst [vmem:[%s3010_s9 + $0xe8] sm:$0xff] %v1505_v31  ;;  %v1507_v59 = vadd.f32 %v1506_v49, %v3005_v51  ;;  %1639 = vst [vmem:[%s3010_s9 + $0x180] sm:$0xff] %v1553_v12  ;;  %v1555_v4 = vadd.f32 %v1554_v54, %v3007_v38 }
 0x2fd   : > { %v1508_v44 = vpop.f32.mrf.mxu0  ;;  %v1556_v16 = vpop.f32.mrf.mxu1 }
 0x2fe   : > { %1621 = vst [vmem:[%s3010_s9 + $0xf0] sm:$0xff] %v1507_v59  ;;  %v1509_v46 = vadd.f32 %v1508_v44, %v3007_v38  ;;  %1640 = vst [vmem:[%s3010_s9 + $0x188] sm:$0xff] %v1555_v4  ;;  %v1557_v48 = vadd.f32 %v1556_v16, %v3005_v51 }
 0x2ff   : > { %v1512_v3 = vpop.f32.mrf.mxu0  ;;  %v1558_v9 = vpop.f32.mrf.mxu1 }
 0x300   : > { %1622 = vst [vmem:[%s3010_s9 + $0xf8] sm:$0xff] %v1509_v46  ;;  %v1513_v42 = vadd.f32 %v1512_v3, %v3005_v51  ;;  %1641 = vst [vmem:[%s3010_s9 + $0x190] sm:$0xff] %v1557_v48  ;;  %v1559_v11 = vadd.f32 %v1558_v9, %v3007_v38 }
 0x301   : > { %v1514_v6 = vpop.f32.mrf.mxu0  ;;  %v1562_v32 = vpop.f32.mrf.mxu1 }
 0x302   : > { %1623 = vst [vmem:[%s3010_s9 + $0x100] sm:$0xff] %v1513_v42  ;;  %v1515_v55 = vadd.f32 %v1514_v6, %v3007_v38  ;;  %1642 = vst [vmem:[%s3010_s9 + $0x198] sm:$0xff] %v1559_v11  ;;  %v1563_v58 = vadd.f32 %v1562_v32, %v3005_v51 }
 0x303   : > { %v1516_v0 = vpop.f32.mrf.mxu0  ;;  %v1564_v35 = vpop.f32.mrf.mxu1 }
 0x304   : > { %1624 = vst [vmem:[%s3010_s9 + $0x108] sm:$0xff] %v1515_v55  ;;  %v1517_v8 = vadd.f32 %v1516_v0, %v3005_v51  ;;  %1643 = vst [vmem:[%s3010_s9 + $0x1a0] sm:$0xff] %v1563_v58  ;;  %v1565_v63 = vadd.f32 %v1564_v35, %v3007_v38 }
 0x305   : > { %v1518_v34 = vpop.f32.mrf.mxu0  ;;  %v1566_v57 = vpop.f32.mrf.mxu1 }
 0x306   : > { %1625 = vst [vmem:[%s3010_s9 + $0x110] sm:$0xff] %v1517_v8  ;;  %v1519_v43 = vadd.f32 %v1518_v34, %v3007_v38  ;;  %1644 = vst [vmem:[%s3010_s9 + $0x1a8] sm:$0xff] %v1565_v63  ;;  %v1567_v50 = vadd.f32 %v1566_v57, %v3005_v51 }
 0x307   : > { %v1568_v15 = vpop.f32.mrf.mxu1 }
 0x308   : > { %1626 = vst [vmem:[%s3010_s9 + $0x118] sm:$0xff] %v1519_v43  ;;  %1645 = vst [vmem:[%s3010_s9 + $0x1b0] sm:$0xff] %v1567_v50  ;;  %v1569_v53 = vadd.f32 %v1568_v15, %v3007_v38 }
 0x309   : > { %v1572_v20 = vpop.f32.mrf.mxu1 }
 0x30a   : > { %1646 = vst [vmem:[%s3010_s9 + $0x1b8] sm:$0xff] %v1569_v53  ;;  %v1573_v5 = vadd.f32 %v1572_v20, %v3005_v51 }
 0x30b   : > { %v1574_v14 = vpop.f32.mrf.mxu1 }
 0x30c   : > { %1647 = vst [vmem:[%s3010_s9 + $0x1c0] sm:$0xff] %v1573_v5  ;;  %v1575_v29 = vadd.f32 %v1574_v14, %v3007_v38 }
 0x30d   : > { %v1576_v10 = vpop.f32.mrf.mxu1 }
 0x30e   : > { %1648 = vst [vmem:[%s3010_s9 + $0x1c8] sm:$0xff] %v1575_v29  ;;  %v1577_v24 = vadd.f32 %v1576_v10, %v3005_v51 }
 0x30f   : > { %v1578_v39 = vpop.f32.mrf.mxu1 }
 0x310   : > { %1649 = vst [vmem:[%s3010_s9 + $0x1d0] sm:$0xff] %v1577_v24  ;;  %v1579_v47 = vadd.f32 %v1578_v39, %v3007_v38 }
 0x311   : > { %v1582_v37 = vpop.f32.mrf.mxu1 }
 0x312   : > { %1650 = vst [vmem:[%s3010_s9 + $0x1d8] sm:$0xff] %v1579_v47  ;;  %v1583_v18 = vadd.f32 %v1582_v37, %v3005_v51 }
 0x313   : > { %v1584_v25 = vpop.f32.mrf.mxu1 }
 0x314   : > { %1651 = vst [vmem:[%s3010_s9 + $0x1e0] sm:$0xff] %v1583_v18  ;;  %v1585_v40 = vadd.f32 %v1584_v25, %v3007_v38 }
 0x315   : > { %v1586_v56 = vpop.f32.mrf.mxu1 }
 0x316   : > { %1652 = vst [vmem:[%s3010_s9 + $0x1e8] sm:$0xff] %v1585_v40  ;;  %v1587_v2 = vadd.f32 %v1586_v56, %v3005_v51 }
 0x317   : > { %v1588_v22 = vpop.f32.mrf.mxu1 }
 0x318   : > { %1653 = vst [vmem:[%s3010_s9 + $0x1f0] sm:$0xff] %v1587_v2  ;;  %v1589_v1 = vadd.f32 %v1588_v22, %v3007_v38 }
 0x31a   : > { %1654 = vst [vmem:[%s3010_s9 + $0x1f8] sm:$0xff] %v1589_v1 }
 0x31b   : > { %2352 = shalt.err (!%p2349_p3)
}
 0x31c   : > { %s2353_s22 = scalar_lea.hbm %s3141_s17, 8192  ;;  %s2357_s8 = scalar_lea.hbm %s3197_s7, 16384 }
 0x31d   : > { %p2354_p4 = scmp.ne.s32.totalorder %s3141_s17, %s2353_s22  ;;  %p2358_p9 = scmp.lt.s32.totalorder %s3141_s17, %s3197_s7 }
 0x31e   : > { %p2359_p10 = scmp.lt.s32.totalorder %s2357_s8, %s2353_s22 }
 0x31f   : > { %p2355_p7 = pnand %p2354_p4, %p2483_p5 }
 0x320   : > { %p2360_p11 = por %p2359_p10, %p2358_p9 }
 0x321   : > { %p2356_p8 = pneg %p2355_p7 }
 0x323   : > { %p2361_p12 = pnand %p2360_p11, %p2356_p8 }
 0x325   : > { %2364 = shalt.err (!%p2361_p12)
}
 0x326   : > { %s2403_s15 = smov 256   ;;  %s2404_s16 = smov 16  }
 0x327   : > { %2005 = dma.vmem_to_hbm [thread:$0]  (%p2483_p5), %s3143_s14, 8192, %s3141_s17, %s3150_s28, %s2403_s15, %s2403_s15, %s2404_s16  }
 0x328 PF: > { %p2011_p13 = scmp.ge.s32.totalorder %s2399_s27, 2  ;;  %s1685_s18 = sand.u32 1, %s2387_s24  }
 0x329   : > { %s1686_s19 = scalar_lea.sflag [#allocation3], %s1685_s18 }
 0x32a   : > { %p2008_p0 = pnand %p2011_p13, %p2487_p6 }
 0x32c   : > { %p2009_p1 = pneg %p2008_p0 }
 0x32e   : > { %2382 = dma.done.wait (%p2009_p1), %s1686_s19, 8192  }
 0x32f   : > { %2384 = vsyncadd (%p2009_p1), %s1686_s19, 4294959104  ;;  %p17_p2 = scmp.ge.s32.totalorder %s2470_s30, 4   ;;  %s3200_s24 = smov %s2391_s25 }
 0x330   : > { %s3201_s25 = smov %s2395_s26  ;;  %s3202_s26 = smov %s2481_s10 }
 0x331   : > { %s3203_s27 = smov %s2470_s30  ;;  %19 = sbr.rel (!%p17_p2) target bundleno = 3 (0x3), region = 83 }
 0x336   :  { %1691 = vsyncpa [#allocation3], 1 }
 0x337   :  { %1693 = vsyncpa [#allocation3 + $0x1], 1 }

</bundles_post_ra>
